<compile_context>
chip_gen: v6e
topology: v6e:2x2x1
jax: 0.10.0
libtpu: 0.0.40
codegen_flags: <defaults>
</compile_context>

<pallas_src>
import functools

import jax
import jax.numpy as jnp
from jax import lax
from jax.experimental import pallas as pl
from jax.experimental.pallas import tpu as pltpu


def _shifted(x, off, D):
    """y[:, d] = x[:, d + off], zero-padded outside [0, D). x is a tiny (TB, D) tile."""
    if off == 0:
        return x
    TB = x.shape[0]
    z = jnp.zeros((TB, abs(off)), jnp.float32)
    if off > 0:
        return jnp.concatenate([x[:, off:], z], axis=1)
    return jnp.concatenate([z, x[:, : D + off]], axis=1)


def _arm_loss_kernel(x_ref, w1_ref, b1_ref, w2s_ref, b2_ref, o_ref, acc_ref, *, inv_total):
    # x_ref : (TB, D)     float32 -- batch tile of input sequences (values are class ids)
    # w1_ref: (3, H)      float32 -- conv1 weights, w1[k, h] = W1[h, 0, k]
    # b1_ref: (1, H)      float32
    # w2s_ref: (3H, C)    float32 -- conv2 weights stacked, w2s[k*H + h, c] = W2[c, h, k]
    # b2_ref: (1, C)      float32
    # o_ref : (1, 1)      float32 (SMEM) -- scalar mean cross-entropy loss
    # acc_ref: (1, 1)     float32 (SMEM scratch) -- running loss sum across grid steps
    step = pl.program_id(0)
    last = pl.num_programs(0) - 1

    x = x_ref[...]                                   # (TB, D)
    TB, D = x.shape
    H = w1_ref.shape[1]
    C = b2_ref.shape[1]

    w1 = w1_ref[...]                                 # (3, H)
    # Hoist small broadcast operands once (JAX does not CSE broadcast_in_dim).
    w1b = [w1[k : k + 1, :].reshape(1, 1, H) for k in range(3)]
    b1 = b1_ref[...].reshape(1, 1, H)

    # Zero-padded shifts of x along the sequence axis (tiny (TB, D) tensors).
    xs = {j: _shifted(x, j, D) for j in range(-2, 3)}

    # Sequence-position index, built once, reused for all boundary masks.
    pos = lax.broadcasted_iota(jnp.int32, (TB, D, 1), 1)

    def hidden_at(off):
        # conv1 -> ReLU evaluated at sequence position (d + off), stored in slot d.
        # Computed directly from shifted x views: no rolled/concatenated copy of h needed.
        pre = (xs[off - 1][:, :, None] * w1b[0]
               + xs[off][:, :, None] * w1b[1]
               + xs[off + 1][:, :, None] * w1b[2]
               + b1)                                  # (TB, D, H), VPU
        a = jnp.maximum(pre, 0.0)
        if off == 0:
            return a
        # conv2 zero padding: hidden positions outside [0, D) contribute 0.
        if off < 0:
            return jnp.where(pos < -off, 0.0, a)
        return jnp.where(pos >= D - off, 0.0, a)

    # ---- fused conv2: one (TB*D, 3H) x (3H, C) MXU matmul, bias added after ----
    op = jnp.concatenate([hidden_at(-1), hidden_at(0), hidden_at(1)], axis=-1)  # (TB, D, 3H)
    op = op.reshape(TB * D, 3 * H)
    logits = jnp.dot(op, w2s_ref[...], preferred_element_type=jnp.float32) + b2_ref[...]

    # ---- cross-entropy (sum over this tile), single pass over the logits ----
    lg = logits.reshape(TB, D, C)
    t = x.astype(jnp.int32)                          # targets (class ids stored as floats)
    m = jnp.max(lg, axis=-1, keepdims=True)
    z = lg - m                                       # reused for exp AND the picked logit
    s = jnp.sum(jnp.exp(z), axis=-1, keepdims=True)  # (TB, D, 1)
    cls = lax.broadcasted_iota(jnp.int32, (TB, D, C), 2)
    z_t = jnp.sum(jnp.where(cls == t[:, :, None], z, 0.0), axis=-1, keepdims=True)
    tile_sum = jnp.sum(jnp.log(s) - z_t)             # sum of per-token NLL in this tile

    @pl.when(step == 0)
    def _():
        acc_ref[0, 0] = 0.0

    acc_ref[0, 0] += tile_sum

    @pl.when(step == last)
    def _():
        o_ref[0, 0] = acc_ref[0, 0] * inv_total


def _pick_block_b(B, D, max_rows=1024):
    """Largest multiple-of-8 divisor of B with block_b * D <= max_rows; else B itself."""
    best = None
    b = 8
    while b <= B:
        if B % b == 0 and b * D <= max_rows:
            best = b
        b += 8
    return best if best is not None else B


def arm_forward_loss(x, w1t, b1, w2t, b2, *, block_b=None):
    """Pallas-backed equivalent of AutoregressiveModel.forward(x)."""
    B, D = x.shape
    H = w1t.shape[1]
    C = b2.shape[1]
    w2s = w2t.reshape(3 * H, C)                      # stacked conv2 weights for the fused dot

    if block_b is None:
        block_b = _pick_block_b(B, D)
    assert B % block_b == 0, "batch size must be divisible by block_b"
    assert block_b == B or block_b % 8 == 0, "block_b must be a multiple of 8 (or == B)"
    grid = (B // block_b,)

    kernel = functools.partial(_arm_loss_kernel, inv_total=1.0 / float(B * D))

    out = pl.pallas_call(
        kernel,
        out_shape=jax.ShapeDtypeStruct((1, 1), jnp.float32),
        grid_spec=pltpu.PrefetchScalarGridSpec(
            num_scalar_prefetch=0,
            grid=grid,
            in_specs=[
                pl.BlockSpec((block_b, D), lambda i: (i, 0)),      # x: tiled over batch
                pl.BlockSpec((3, H), lambda i: (0, 0)),            # weights: resident
                pl.BlockSpec((1, H), lambda i: (0, 0)),
                pl.BlockSpec((3 * H, C), lambda i: (0, 0)),
                pl.BlockSpec((1, C), lambda i: (0, 0)),
            ],
            out_specs=pl.BlockSpec((1, 1), lambda i: (0, 0),
                                   memory_space=pltpu.MemorySpace.SMEM),
            scratch_shapes=[pltpu.SMEM((1, 1), jnp.float32)],
        ),
        compiler_params=pltpu.CompilerParams(
            dimension_semantics=("arbitrary",),      # output/scratch carried across steps
            vmem_limit_bytes=32 * 1024 * 1024,       # explicit limit, safe on v5e/v6e/v7x
        ),
    )(x, w1t, b1, w2s, b2)
    return out[0, 0]


def arm_forward_loss_ref(x, w1t, b1, w2t, b2):
    """Pure-JAX reference for correctness checking."""
    B, D = x.shape
    xp = jnp.pad(x, ((0, 0), (1, 1)))
    xs = [xp[:, k : k + D] for k in range(3)]
    h = sum(xs[k][:, :, None] * w1t[k][None, None, :] for k in range(3)) + b1[0]
    h = jnp.maximum(h, 0.0)                          # (B, D, H)
    hp = jnp.pad(h, ((0, 0), (1, 1), (0, 0)))
    logits = (
        sum(jnp.einsum("bdh,hc->bdc", hp[:, k : k + D, :], w2t[k]) for k in range(3))
        + b2[0]
    )                                                # (B, D, C)
    t = x.astype(jnp.int32)
    logp = jax.nn.log_softmax(logits, axis=-1)
    nll = -jnp.take_along_axis(logp, t[:, :, None], axis=-1)[..., 0]
    return jnp.mean(nll)


# TODO(synk): `inference()` uses torch.multinomial sequential sampling; not part of
# forward() and not implemented here.

if __name__ == "__main__":
    B, DIM, NUM_CLASSES, HIDDEN = 16, 16, 10, 32

    key = jax.random.PRNGKey(0)
    kx, k1, k2, k3, k4 = jax.random.split(key, 5)

    # Deterministic synthetic parameters (Conv1d shapes: (H,1,3) and (C,H,3),
    # stored pre-transposed for the kernel).
    w1t = jax.random.normal(k1, (3, HIDDEN), jnp.float32) * (1.0 / 3.0**0.5)
    b1 = jax.random.normal(k2, (1, HIDDEN), jnp.float32) * 0.1
    w2t = jax.random.normal(k3, (3, HIDDEN, NUM_CLASSES), jnp.float32) * (
        1.0 / (3.0 * HIDDEN) ** 0.5
    )
    b2 = jax.random.normal(k4, (1, NUM_CLASSES), jnp.float32) * 0.1

    # x holds integer class ids as floats (matches x.long() target usage).
    x = jax.random.randint(kx, (B, DIM), 0, NUM_CLASSES).astype(jnp.float32)

    # block_b=8 -> grid of 2 steps: exercises tiled pipelining + loss accumulation.
    loss = jax.block_until_ready(arm_forward_loss(x, w1t, b1, w2t, b2, block_b=8))
    loss_ref = jax.block_until_ready(arm_forward_loss_ref(x, w1t, b1, w2t, b2))

    assert jnp.isfinite(loss), "non-finite loss from Pallas kernel"
    assert jnp.allclose(loss, loss_ref, rtol=1e-4, atol=1e-4), (loss, loss_ref)
    print("KERNEL_OK")
</pallas_src>

<mosaic_0001>
module attributes {stable_mosaic.version = 11 : i64} {
  func.func @_arm_loss_kernel(%arg0: i32, %arg1: memref<8x16xf32, #tpu.memory_space<vmem>>, %arg2: memref<3x32xf32, #tpu.memory_space<vmem>>, %arg3: memref<1x32xf32, #tpu.memory_space<vmem>>, %arg4: memref<96x10xf32, #tpu.memory_space<vmem>>, %arg5: memref<1x10xf32, #tpu.memory_space<vmem>>, %arg6: memref<1x1xf32, #tpu.memory_space<smem>>, %arg7: memref<1x1xf32, #tpu.memory_space<smem>>) attributes {dimension_semantics = [#tpu.dimension_semantics<arbitrary>], iteration_bounds = array<i64: 2>, scalar_prefetch = 0 : i64, scratch_operands = 1 : i64, tpu.core_type = #tpu.core_type<tc>, window_params = [{transform_indices = @transform_0, window_bounds = array<i64: 8, 16>}, {pipeline_mode = #tpu.pipeline_mode<synchronous>, transform_indices = @transform_1, window_bounds = array<i64: 3, 32>}, {pipeline_mode = #tpu.pipeline_mode<synchronous>, transform_indices = @transform_2, window_bounds = array<i64: 1, 32>}, {pipeline_mode = #tpu.pipeline_mode<synchronous>, transform_indices = @transform_3, window_bounds = array<i64: 96, 10>}, {pipeline_mode = #tpu.pipeline_mode<synchronous>, transform_indices = @transform_4, window_bounds = array<i64: 1, 10>}, {transform_indices = @transform_5, window_bounds = array<i64: 1, 1>}]} {
    %c0 = arith.constant 0 : index
    %c0_0 = arith.constant 0 : index
    %0 = vector.load %arg1[%c0, %c0_0] : memref<8x16xf32, #tpu.memory_space<vmem>>, vector<8x16xf32>
    %c0_1 = arith.constant 0 : index
    %c0_2 = arith.constant 0 : index
    %1 = vector.load %arg2[%c0_1, %c0_2] : memref<3x32xf32, #tpu.memory_space<vmem>>, vector<3x32xf32>
    %2 = vector.extract_strided_slice %1 {offsets = [0, 0], sizes = [1, 32], strides = [1, 1]} : vector<3x32xf32> to vector<1x32xf32>
    %3 = vector.shape_cast %2 : vector<1x32xf32> to vector<1x1x32xf32>
    %4 = vector.extract_strided_slice %1 {offsets = [1, 0], sizes = [1, 32], strides = [1, 1]} : vector<3x32xf32> to vector<1x32xf32>
    %5 = vector.shape_cast %4 : vector<1x32xf32> to vector<1x1x32xf32>
    %6 = vector.extract_strided_slice %1 {offsets = [2, 0], sizes = [1, 32], strides = [1, 1]} : vector<3x32xf32> to vector<1x32xf32>
    %7 = vector.shape_cast %6 : vector<1x32xf32> to vector<1x1x32xf32>
    %c0_3 = arith.constant 0 : index
    %c0_4 = arith.constant 0 : index
    %8 = vector.load %arg3[%c0_3, %c0_4] : memref<1x32xf32, #tpu.memory_space<vmem>>, vector<1x32xf32>
    %9 = vector.shape_cast %8 : vector<1x32xf32> to vector<1x1x32xf32>
    %cst = arith.constant 0.000000e+00 : f32
    %10 = vector.broadcast %cst : f32 to vector<8x2xf32>
    %11 = vector.extract_strided_slice %0 {offsets = [0, 0], sizes = [8, 14], strides = [1, 1]} : vector<8x16xf32> to vector<8x14xf32>
    %12 = tpu.concatenate %10, %11 in 1 : vector<8x2xf32>, vector<8x14xf32> -> vector<8x16xf32>
    %cst_5 = arith.constant 0.000000e+00 : f32
    %13 = vector.broadcast %cst_5 : f32 to vector<8x1xf32>
    %14 = vector.extract_strided_slice %0 {offsets = [0, 0], sizes = [8, 15], strides = [1, 1]} : vector<8x16xf32> to vector<8x15xf32>
    %15 = tpu.concatenate %13, %14 in 1 : vector<8x1xf32>, vector<8x15xf32> -> vector<8x16xf32>
    %cst_6 = arith.constant 0.000000e+00 : f32
    %16 = vector.broadcast %cst_6 : f32 to vector<8x1xf32>
    %17 = vector.extract_strided_slice %0 {offsets = [0, 1], sizes = [8, 15], strides = [1, 1]} : vector<8x16xf32> to vector<8x15xf32>
    %18 = tpu.concatenate %17, %16 in 1 : vector<8x15xf32>, vector<8x1xf32> -> vector<8x16xf32>
    %cst_7 = arith.constant 0.000000e+00 : f32
    %19 = vector.broadcast %cst_7 : f32 to vector<8x2xf32>
    %20 = vector.extract_strided_slice %0 {offsets = [0, 2], sizes = [8, 14], strides = [1, 1]} : vector<8x16xf32> to vector<8x14xf32>
    %21 = tpu.concatenate %20, %19 in 1 : vector<8x14xf32>, vector<8x2xf32> -> vector<8x16xf32>
    %22 = tpu.iota {dimensions = array<i32: 1>} : vector<8x16x1xi32>
    %23 = vector.shape_cast %12 : vector<8x16xf32> to vector<8x16x1xf32>
    %24 = vector.broadcast %23 : vector<8x16x1xf32> to vector<8x16x32xf32>
    %25 = vector.broadcast %3 : vector<1x1x32xf32> to vector<8x16x32xf32>
    %26 = arith.mulf %24, %25 : vector<8x16x32xf32>
    %27 = vector.shape_cast %15 : vector<8x16xf32> to vector<8x16x1xf32>
    %28 = vector.broadcast %27 : vector<8x16x1xf32> to vector<8x16x32xf32>
    %29 = vector.broadcast %5 : vector<1x1x32xf32> to vector<8x16x32xf32>
    %30 = arith.mulf %28, %29 : vector<8x16x32xf32>
    %31 = arith.addf %26, %30 : vector<8x16x32xf32>
    %32 = vector.shape_cast %0 : vector<8x16xf32> to vector<8x16x1xf32>
    %33 = vector.broadcast %32 : vector<8x16x1xf32> to vector<8x16x32xf32>
    %34 = vector.broadcast %7 : vector<1x1x32xf32> to vector<8x16x32xf32>
    %35 = arith.mulf %33, %34 : vector<8x16x32xf32>
    %36 = arith.addf %31, %35 : vector<8x16x32xf32>
    %37 = vector.broadcast %9 : vector<1x1x32xf32> to vector<8x16x32xf32>
    %38 = arith.addf %36, %37 : vector<8x16x32xf32>
    %cst_8 = arith.constant 0.000000e+00 : f32
    %39 = vector.broadcast %cst_8 : f32 to vector<8x16x32xf32>
    %40 = arith.maximumf %38, %39 : vector<8x16x32xf32>
    %c1_i32 = arith.constant 1 : i32
    %41 = vector.broadcast %c1_i32 : i32 to vector<8x16x1xi32>
    %42 = arith.cmpi slt, %22, %41 : vector<8x16x1xi32>
    %cst_9 = arith.constant 0.000000e+00 : f32
    %43 = vector.shape_cast %42 : vector<8x16x1xi1> to vector<8x16x1xi1>
    %44 = vector.broadcast %43 : vector<8x16x1xi1> to vector<8x16x32xi1>
    %45 = vector.broadcast %cst_9 : f32 to vector<8x16x32xf32>
    %46 = arith.select %44, %45, %40 : vector<8x16x32xi1>, vector<8x16x32xf32>
    %47 = vector.shape_cast %15 : vector<8x16xf32> to vector<8x16x1xf32>
    %48 = vector.broadcast %47 : vector<8x16x1xf32> to vector<8x16x32xf32>
    %49 = vector.broadcast %3 : vector<1x1x32xf32> to vector<8x16x32xf32>
    %50 = arith.mulf %48, %49 : vector<8x16x32xf32>
    %51 = vector.shape_cast %0 : vector<8x16xf32> to vector<8x16x1xf32>
    %52 = vector.broadcast %51 : vector<8x16x1xf32> to vector<8x16x32xf32>
    %53 = vector.broadcast %5 : vector<1x1x32xf32> to vector<8x16x32xf32>
    %54 = arith.mulf %52, %53 : vector<8x16x32xf32>
    %55 = arith.addf %50, %54 : vector<8x16x32xf32>
    %56 = vector.shape_cast %18 : vector<8x16xf32> to vector<8x16x1xf32>
    %57 = vector.broadcast %56 : vector<8x16x1xf32> to vector<8x16x32xf32>
    %58 = vector.broadcast %7 : vector<1x1x32xf32> to vector<8x16x32xf32>
    %59 = arith.mulf %57, %58 : vector<8x16x32xf32>
    %60 = arith.addf %55, %59 : vector<8x16x32xf32>
    %61 = vector.broadcast %9 : vector<1x1x32xf32> to vector<8x16x32xf32>
    %62 = arith.addf %60, %61 : vector<8x16x32xf32>
    %cst_10 = arith.constant 0.000000e+00 : f32
    %63 = vector.broadcast %cst_10 : f32 to vector<8x16x32xf32>
    %64 = arith.maximumf %62, %63 : vector<8x16x32xf32>
    %65 = vector.shape_cast %0 : vector<8x16xf32> to vector<8x16x1xf32>
    %66 = vector.broadcast %65 : vector<8x16x1xf32> to vector<8x16x32xf32>
    %67 = vector.broadcast %3 : vector<1x1x32xf32> to vector<8x16x32xf32>
    %68 = arith.mulf %66, %67 : vector<8x16x32xf32>
    %69 = vector.shape_cast %18 : vector<8x16xf32> to vector<8x16x1xf32>
    %70 = vector.broadcast %69 : vector<8x16x1xf32> to vector<8x16x32xf32>
    %71 = vector.broadcast %5 : vector<1x1x32xf32> to vector<8x16x32xf32>
    %72 = arith.mulf %70, %71 : vector<8x16x32xf32>
    %73 = arith.addf %68, %72 : vector<8x16x32xf32>
    %74 = vector.shape_cast %21 : vector<8x16xf32> to vector<8x16x1xf32>
    %75 = vector.broadcast %74 : vector<8x16x1xf32> to vector<8x16x32xf32>
    %76 = vector.broadcast %7 : vector<1x1x32xf32> to vector<8x16x32xf32>
    %77 = arith.mulf %75, %76 : vector<8x16x32xf32>
    %78 = arith.addf %73, %77 : vector<8x16x32xf32>
    %79 = vector.broadcast %9 : vector<1x1x32xf32> to vector<8x16x32xf32>
    %80 = arith.addf %78, %79 : vector<8x16x32xf32>
    %cst_11 = arith.constant 0.000000e+00 : f32
    %81 = vector.broadcast %cst_11 : f32 to vector<8x16x32xf32>
    %82 = arith.maximumf %80, %81 : vector<8x16x32xf32>
    %c15_i32 = arith.constant 15 : i32
    %83 = vector.broadcast %c15_i32 : i32 to vector<8x16x1xi32>
    %84 = arith.cmpi sge, %22, %83 : vector<8x16x1xi32>
    %cst_12 = arith.constant 0.000000e+00 : f32
    %85 = vector.shape_cast %84 : vector<8x16x1xi1> to vector<8x16x1xi1>
    %86 = vector.broadcast %85 : vector<8x16x1xi1> to vector<8x16x32xi1>
    %87 = vector.broadcast %cst_12 : f32 to vector<8x16x32xf32>
    %88 = arith.select %86, %87, %82 : vector<8x16x32xi1>, vector<8x16x32xf32>
    %89 = tpu.concatenate %46, %64, %88 in 2 : vector<8x16x32xf32>, vector<8x16x32xf32>, vector<8x16x32xf32> -> vector<8x16x96xf32>
    %90 = vector.shape_cast %89 : vector<8x16x96xf32> to vector<128x96xf32>
    %c0_13 = arith.constant 0 : index
    %c0_14 = arith.constant 0 : index
    %91 = vector.load %arg4[%c0_13, %c0_14] : memref<96x10xf32, #tpu.memory_space<vmem>>, vector<96x10xf32>
    %cst_15 = arith.constant dense<0.000000e+00> : vector<128x10xf32>
    %92 = tpu.matmul %90, %91, %cst_15 {dimension_numbers = #tpu.dot_dimension_numbers<[1], [0], [0], [1], [0, 0, 1, 1], [], []>} : vector<128x96xf32>, vector<96x10xf32>, vector<128x10xf32> -> vector<128x10xf32>
    %c0_16 = arith.constant 0 : index
    %c0_17 = arith.constant 0 : index
    %93 = vector.load %arg5[%c0_16, %c0_17] : memref<1x10xf32, #tpu.memory_space<vmem>>, vector<1x10xf32>
    %94 = vector.broadcast %93 : vector<1x10xf32> to vector<128x10xf32>
    %95 = arith.addf %92, %94 : vector<128x10xf32>
    %96 = vector.shape_cast %95 : vector<128x10xf32> to vector<8x16x10xf32>
    %97 = arith.fptosi %0 : vector<8x16xf32> to vector<8x16xi32>
    %cst_18 = arith.constant dense<0xFF800000> : vector<8x16xf32>
    %98 = vector.multi_reduction <maximumf>, %96, %cst_18 [2] : vector<8x16x10xf32> to vector<8x16xf32>
    %99 = vector.shape_cast %98 : vector<8x16xf32> to vector<8x16x1xf32>
    %100 = vector.broadcast %99 : vector<8x16x1xf32> to vector<8x16x10xf32>
    %101 = arith.subf %96, %100 : vector<8x16x10xf32>
    %102 = math.exp %101 : vector<8x16x10xf32>
    %cst_19 = arith.constant dense<0.000000e+00> : vector<8x16xf32>
    %103 = vector.multi_reduction <add>, %102, %cst_19 [2] : vector<8x16x10xf32> to vector<8x16xf32>
    %104 = vector.shape_cast %103 : vector<8x16xf32> to vector<8x16x1xf32>
    %105 = tpu.iota {dimensions = array<i32: 2>} : vector<8x16x10xi32>
    %106 = vector.shape_cast %97 : vector<8x16xi32> to vector<8x16x1xi32>
    %107 = vector.broadcast %106 : vector<8x16x1xi32> to vector<8x16x10xi32>
    %108 = arith.cmpi eq, %105, %107 : vector<8x16x10xi32>
    %cst_20 = arith.constant 0.000000e+00 : f32
    %109 = vector.broadcast %cst_20 : f32 to vector<8x16x10xf32>
    %110 = arith.select %108, %101, %109 : vector<8x16x10xi1>, vector<8x16x10xf32>
    %cst_21 = arith.constant dense<0.000000e+00> : vector<8x16xf32>
    %111 = vector.multi_reduction <add>, %110, %cst_21 [2] : vector<8x16x10xf32> to vector<8x16xf32>
    %112 = vector.shape_cast %111 : vector<8x16xf32> to vector<8x16x1xf32>
    %113 = math.log %104 : vector<8x16x1xf32>
    %114 = arith.subf %113, %112 : vector<8x16x1xf32>
    %115 = vector.shape_cast %114 : vector<8x16x1xf32> to vector<1x8x16x1xf32>
    %cst_22 = arith.constant dense<0.000000e+00> : vector<1xf32>
    %116 = vector.multi_reduction <add>, %115, %cst_22 [1, 2, 3] : vector<1x8x16x1xf32> to vector<1xf32>
    %117 = vector.shape_cast %116 : vector<1xf32> to vector<1x1x1x1xf32>
    %118 = vector.extract %117[0, 0, 0, 0] : f32 from vector<1x1x1x1xf32>
    %c0_i32 = arith.constant 0 : i32
    %119 = arith.cmpi eq, %arg0, %c0_i32 : i32
    %120 = arith.extui %119 : i1 to i32
    %c0_i32_23 = arith.constant 0 : i32
    %121 = arith.cmpi ne, %120, %c0_i32_23 : i32
    scf.if %121 {
      %cst_30 = arith.constant 0.000000e+00 : f32
      %c0_31 = arith.constant 0 : index
      %c0_32 = arith.constant 0 : index
      %128 = memref.load %arg7[%c0_31, %c0_32] : memref<1x1xf32, #tpu.memory_space<smem>>
      memref.store %cst_30, %arg7[%c0_31, %c0_32] : memref<1x1xf32, #tpu.memory_space<smem>>
    } else {
    }
    %c0_24 = arith.constant 0 : index
    %c0_25 = arith.constant 0 : index
    %122 = memref.load %arg7[%c0_24, %c0_25] : memref<1x1xf32, #tpu.memory_space<smem>>
    %123 = arith.addf %122, %118 : f32
    %c0_26 = arith.constant 0 : index
    %c0_27 = arith.constant 0 : index
    %124 = memref.load %arg7[%c0_26, %c0_27] : memref<1x1xf32, #tpu.memory_space<smem>>
    memref.store %123, %arg7[%c0_26, %c0_27] : memref<1x1xf32, #tpu.memory_space<smem>>
    %c1_i32_28 = arith.constant 1 : i32
    %125 = arith.cmpi eq, %arg0, %c1_i32_28 : i32
    %126 = arith.extui %125 : i1 to i32
    %c0_i32_29 = arith.constant 0 : i32
    %127 = arith.cmpi ne, %126, %c0_i32_29 : i32
    scf.if %127 {
      %c0_30 = arith.constant 0 : index
      %c0_31 = arith.constant 0 : index
      %128 = memref.load %arg7[%c0_30, %c0_31] : memref<1x1xf32, #tpu.memory_space<smem>>
      %cst_32 = arith.constant 3.906250e-03 : f32
      %129 = arith.mulf %128, %cst_32 : f32
      %c0_33 = arith.constant 0 : index
      %c0_34 = arith.constant 0 : index
      %130 = memref.load %arg6[%c0_33, %c0_34] : memref<1x1xf32, #tpu.memory_space<smem>>
      memref.store %129, %arg6[%c0_33, %c0_34] : memref<1x1xf32, #tpu.memory_space<smem>>
    } else {
    }
    return
  }
  func.func @transform_0(%arg0: i32) -> (i32, i32) {
    %c0_i32 = arith.constant 0 : i32
    %c0_i32_0 = arith.constant 0 : i32
    return %arg0, %c0_i32 : i32, i32
  }
  func.func @transform_1(%arg0: i32) -> (i32, i32) {
    %c0_i32 = arith.constant 0 : i32
    %c0_i32_0 = arith.constant 0 : i32
    %c0_i32_1 = arith.constant 0 : i32
    return %c0_i32, %c0_i32_0 : i32, i32
  }
  func.func @transform_2(%arg0: i32) -> (i32, i32) {
    %c0_i32 = arith.constant 0 : i32
    %c0_i32_0 = arith.constant 0 : i32
    %c0_i32_1 = arith.constant 0 : i32
    return %c0_i32, %c0_i32_0 : i32, i32
  }
  func.func @transform_3(%arg0: i32) -> (i32, i32) {
    %c0_i32 = arith.constant 0 : i32
    %c0_i32_0 = arith.constant 0 : i32
    %c0_i32_1 = arith.constant 0 : i32
    return %c0_i32, %c0_i32_0 : i32, i32
  }
  func.func @transform_4(%arg0: i32) -> (i32, i32) {
    %c0_i32 = arith.constant 0 : i32
    %c0_i32_0 = arith.constant 0 : i32
    %c0_i32_1 = arith.constant 0 : i32
    return %c0_i32, %c0_i32_0 : i32, i32
  }
  func.func @transform_5(%arg0: i32) -> (i32, i32) {
    %c0_i32 = arith.constant 0 : i32
    %c0_i32_0 = arith.constant 0 : i32
    %c0_i32_1 = arith.constant 0 : i32
    return %c0_i32, %c0_i32_0 : i32, i32
  }
}

</mosaic_0001>

<bundles_post_ra>
// kernel: tpu_custom_call.1
= control target key start
LH: loop header
LB: loop body
LE: loop exit
PB: predicated region body
PF: predicated region fallthrough
CT: control target
= control target key end

     0   :  { %10 = vsyncpa [#allocation4], 0  ;;  %s2202_s18 = smov 0   ;;  %s3231_s0 = inlined_call_operand.vmem [shape: f32[16,16], index: 0, kind: input, shape index: {}]   ;;  %s3232_s1 = inlined_call_operand.vmem [shape: f32[3,32], index: 1, kind: input, shape index: {}]   ;;  %s3233_s2 = inlined_call_operand.vmem [shape: f32[1,32], index: 2, kind: input, shape index: {}]   ;;  %s3234_s3 = inlined_call_operand.vmem [shape: f32[96,10], index: 3, kind: input, shape index: {}]   ;;  %s3235_s4 = inlined_call_operand.vmem [shape: f32[1,10], index: 4, kind: input, shape index: {}]   ;;  %s3236_s5 = inlined_call_operand.hbm [shape: f32[1,1], index: 5, kind: output, shape index: {}]  }
   0x1 LB: > { %s2208_s19 = sadd.s32 4294967295, %s2162_s18   ;;  %p1918_p0 = scmp.ge.s32.totalorder %s2162_s18, 1  ;;  %s2162_s18 = sphi %s2202_s18, %s16_s18  }
   0x2   : > { %p182_p1 = scmp.lt.s32.totalorder %s2162_s18, 3 }
   0x4   : > { %p183_p2 = pnand %p1918_p0, %p182_p1 }
   0x6   : > { %186 = sbr.rel (%p183_p2) target bundleno = 1293 (0x50d), region = 40 }
   0xb   : > { %p204_p3 = scmp.lt.s32.totalorder %s2208_s19, 1  ;;  %v3237_v0 = vlaneseq  ;;  %s2164_s25 = smov 1   ;;  %vm220_vm0 = vcmask 7168   ;;  %vm225_vm1 = vcmask 121856   ;;  %vm230_vm2 = vcmask 113664  }
   0xc   : > { %s2165_s26 = smov 126   ;;  %s2166_s27 = smov 127   ;;  %vm215_vm3 = vcmask 15360   ;;  %vm1201_vm6 = vcmask 261120   ;;  %vm1218_vm7 = vcmask 523264   ;;  %vm1254_vm8 = vcmask 785408  }
   0xd   : > { %s205_s20 = scalar_select %p204_p3, %s2208_s19, 1  ;;  %v2215_v1 = vshrl.u32 %v3237_v0, 7  ;;  %vm1449_vm9 = vcmask 80896  }
   0xe   : > { %s2167_s28 = smov 2   ;;  %s2168_s8 = smov 64  }
   0xf   : > { %s1919_s21 = sshll.u32 %s205_s20, 3  ;;  %v2224_v3 = vsub.s32 0, %v2215_v1  ;;  %v2228_v5 = vsub.s32 1, %v2215_v1  ;;  %v2232_v7 = vsub.s32 2, %v2215_v1  ;;  %v2236_v9 = vsub.s32 3, %v2215_v1  ;;  %s2169_s9 = smov 32  }
  0x10   : > { %s2220_s24 = scalar_lea.vmem %s3231_s0, %s1919_s21  ;;  %v2240_v11 = vsub.s32 4, %v2215_v1  ;;  %v2244_v13 = vsub.s32 5, %v2215_v1  ;;  %v2248_v15 = vsub.s32 6, %v2215_v1  ;;  %v2252_v17 = vsub.s32 7, %v2215_v1  ;;  %p2056_p4 = scmp.eq.s32.totalorder %s2208_s19, 0 }
  0x11   : > { %v208_v2 = vld [vmem:[%s2220_s24] sm:$0xff]  ;;  %vm629_vm4 = vcmp.lt.s32.totalorder %v2215_v1, 1  ;;  %s2170_s15 = smov 0.0   ;;  %p2057_p5 = scmp.eq.s32.totalorder %s2208_s19, 1 }
  0x12   : > { %217 = vrot.lane.b32.xlu0 %v208_v2, %s2164_s25  ;;  %227 = vrot.lane.b32.xlu1 %v208_v2, %s2165_s26  ;;  %v470_v4 = vrot.slane %v208_v2, %v2224_v3  ;;  %v481_v6 = vrot.slane %v208_v2, %v2228_v5  ;;  %v492_v8 = vrot.slane %v208_v2, %v2232_v7  ;;  %2049 = sst [smem:[#allocation2]] (%p2056_p4), %s2170_s15  ;;  %s2171_s22 = smov [#allocation3]  }
  0x13   : > { %v503_v10 = vrot.slane %v208_v2, %v2236_v9  ;;  %v514_v12 = vrot.slane %v208_v2, %v2240_v11  ;;  %v525_v14 = vrot.slane %v208_v2, %v2244_v13  ;;  %v536_v16 = vrot.slane %v208_v2, %v2248_v15  ;;  %3253 = vst [vmem:[#allocation6_spill] sm:$0xff] %v2252_v17  ;;  %s1858_s16 = sld [smem:[#allocation2]] }
  0x14   : > { %v547_v18 = vrot.slane %v208_v2, %v2252_v17 }
  0x16   : > { %222 = vrot.lane.b32.xlu0 %v208_v2, %s2166_s27  ;;  %212 = vrot.lane.b32.xlu1 %v208_v2, %s2167_s28 }
  0x1a   : > { %472 = vbcast.lane.b32.xlu1 %v470_v4, 256 }
  0x1e   : > { %476 = vbcast.lane.b32.xlu1 %v470_v4, 264 }
  0x22   : > { %483 = vbcast.lane.b32.xlu1 %v481_v6, 256 }
  0x26   : > { %487 = vbcast.lane.b32.xlu1 %v481_v6, 264 }
  0x2a   : > { %494 = vbcast.lane.b32.xlu1 %v492_v8, 256 }
  0x2e   : > { %498 = vbcast.lane.b32.xlu1 %v492_v8, 264 }
  0x32   : > { %505 = vbcast.lane.b32.xlu1 %v503_v10, 256 }
  0x36   : > { %509 = vbcast.lane.b32.xlu1 %v503_v10, 264 }
  0x3a   : > { %516 = vbcast.lane.b32.xlu1 %v514_v12, 256 }
  0x3e   : > { %520 = vbcast.lane.b32.xlu1 %v514_v12, 264 }
  0x42   : > { %527 = vbcast.lane.b32.xlu1 %v525_v14, 256 }
  0x46   : > { %531 = vbcast.lane.b32.xlu1 %v525_v14, 264 }
  0x4a   : > { %538 = vbcast.lane.b32.xlu1 %v536_v16, 256 }
  0x4e   : > { %542 = vbcast.lane.b32.xlu1 %v536_v16, 264 }
  0x52   : > { %549 = vbcast.lane.b32.xlu1 %v547_v18, 256 }
  0x56   : > { %553 = vbcast.lane.b32.xlu1 %v547_v18, 264 }
  0x84   : > { %v218_v19 = vpop.permute.xlu0 %217  ;;  %v228_v22 = vpop.permute.xlu1 %227 }
  0x85   : > { %v2256_v20 = vsel %vm220_vm0, 0.0, %v218_v19  ;;  %v231_v25 = vsel %vm230_vm2, %v228_v22, 0.0 }
  0x86   : > { %v346_v21 = vrot.slane %v2256_v20, %v2224_v3  ;;  %v902_v27 = vrot.slane %v231_v25, %v2224_v3  ;;  %v357_v29 = vrot.slane %v2256_v20, %v2228_v5  ;;  %v913_v30 = vrot.slane %v231_v25, %v2228_v5 }
  0x87   : > { %v924_v33 = vrot.slane %v231_v25, %v2232_v7  ;;  %v368_v37 = vrot.slane %v2256_v20, %v2232_v7  ;;  %v935_v38 = vrot.slane %v231_v25, %v2236_v9  ;;  %v946_v41 = vrot.slane %v231_v25, %v2240_v11 }
  0x88   : > { %348 = vbcast.lane.b32.xlu0 %v346_v21, 256  ;;  %v223_v23 = vpop.permute.xlu0 %222  ;;  %v213_v31 = vpop.permute.xlu1 %212  ;;  %v379_v44 = vrot.slane %v2256_v20, %v2236_v9  ;;  %v957_v45 = vrot.slane %v231_v25, %v2244_v13  ;;  %v968_v49 = vrot.slane %v231_v25, %v2248_v15  ;;  %v390_v53 = vrot.slane %v2256_v20, %v2240_v11 }
  0x89   : > { %v226_v24 = vsel %vm225_vm1, %v223_v23, 0.0  ;;  %v216_v52 = vsel %vm215_vm3, 0.0, %v213_v31  ;;  %v979_v54 = vrot.slane %v231_v25, %v2252_v17  ;;  %v401_v62 = vrot.slane %v2256_v20, %v2244_v13  ;;  %v209_v23 = vld [vmem:[%s3232_s1] sm:$0x7] }
  0x8a   : > { %v702_v26 = vrot.slane %v226_v24, %v2224_v3  ;;  %v713_v28 = vrot.slane %v226_v24, %v2228_v5  ;;  %v724_v32 = vrot.slane %v226_v24, %v2232_v7  ;;  %v735_v35 = vrot.slane %v226_v24, %v2236_v9 }
  0x8b   : > { %v746_v39 = vrot.slane %v226_v24, %v2240_v11  ;;  %v757_v43 = vrot.slane %v226_v24, %v2244_v13  ;;  %v768_v47 = vrot.slane %v226_v24, %v2248_v15  ;;  %v779_v50 = vrot.slane %v226_v24, %v2252_v17 }
  0x8c   : > { %352 = vbcast.lane.b32.xlu0 %v346_v21, 264  ;;  %708 = vbcast.lane.b32.xlu1 %v702_v26, 264  ;;  %v2268_v34 = vpop.permute.xlu1 %472  ;;  %v2299_v55 = vrot.slane %v216_v52, %v2224_v3  ;;  %v2305_v57 = vrot.slane %v216_v52, %v2228_v5  ;;  %v2311_v59 = vrot.slane %v216_v52, %v2232_v7 }
  0x8d   : > { %v271_v60 = vrot.slane %v216_v52, %v2236_v9  ;;  %v282_v2 = vrot.slane %v216_v52, %v2240_v11  ;;  %v293_v6 = vrot.slane %v216_v52, %v2244_v13  ;;  %v412_v8 = vrot.slane %v2256_v20, %v2248_v15 }
  0x8e   : > { %v304_v12 = vrot.slane %v216_v52, %v2248_v15  ;;  %v423_v18 = vrot.slane %v2256_v20, %v2252_v17  ;;  %v315_v19 = vrot.slane %v216_v52, %v2252_v17  ;;  %v2349_v20 = vrot.slane %v209_v23, %v2224_v3 }
  0x90   : > { %704 = vbcast.lane.b32.xlu0 %v702_v26, 256  ;;  %908 = vbcast.lane.b32.xlu1 %v902_v27, 264  ;;  %v2271_v36 = vpop.permute.xlu1 %476  ;;  %v2352_v26 = vrot.slane %v209_v23, %v2228_v5 }
  0x94   : > { %904 = vbcast.lane.b32.xlu0 %v902_v27, 256  ;;  %719 = vbcast.lane.b32.xlu1 %v713_v28, 264  ;;  %v2277_v40 = vpop.permute.xlu1 %483 }
  0x95   : > { %3254 = vst [vmem:[#allocation7_spill] sm:$0xff] %v2277_v40 }
  0x98   : > { %359 = vbcast.lane.b32.xlu0 %v357_v29, 256  ;;  %919 = vbcast.lane.b32.xlu1 %v913_v30, 264  ;;  %v2280_v42 = vpop.permute.xlu1 %487 }
  0x99   : > { %3255 = vst [vmem:[#allocation8_spill] sm:$0xff] %v2280_v42 }
  0x9c   : > { %363 = vbcast.lane.b32.xlu0 %v357_v29, 264  ;;  %730 = vbcast.lane.b32.xlu1 %v724_v32, 264  ;;  %v2286_v46 = vpop.permute.xlu1 %494 }
  0x9d   : > { %3256 = vst [vmem:[#allocation9_spill] sm:$0xff] %v2286_v46 }
  0xa0   : > { %715 = vbcast.lane.b32.xlu0 %v713_v28, 256  ;;  %930 = vbcast.lane.b32.xlu1 %v924_v33, 264  ;;  %v2289_v48 = vpop.permute.xlu1 %498 }
  0xa1   : > { %3257 = vst [vmem:[#allocation10_spill] sm:$0xff] %v2289_v48 }
  0xa4   : > { %915 = vbcast.lane.b32.xlu0 %v913_v30, 256  ;;  %741 = vbcast.lane.b32.xlu1 %v735_v35, 264  ;;  %v2293_v51 = vpop.permute.xlu1 %505  ;;  %v2358_v30 = vrot.slane %v209_v23, %v2232_v7  ;;  %v669_v23 = vmul.f32 %v2277_v40, %v2352_v26 }
  0xa5   : > { %3258 = vst [vmem:[#allocation11_spill] sm:$0xff] %v2293_v51 }
  0xa8   : > { %370 = vbcast.lane.b32.xlu0 %v368_v37, 256  ;;  %941 = vbcast.lane.b32.xlu1 %v935_v38, 264  ;;  %v2301_v56 = vpop.permute.xlu1 %509 }
  0xac   : > { %374 = vbcast.lane.b32.xlu0 %v368_v37, 264  ;;  %752 = vbcast.lane.b32.xlu1 %v746_v39, 264  ;;  %v2307_v58 = vpop.permute.xlu1 %516 }
  0xb0   : > { %726 = vbcast.lane.b32.xlu0 %v724_v32, 256  ;;  %952 = vbcast.lane.b32.xlu1 %v946_v41, 264  ;;  %v2315_v61 = vpop.permute.xlu1 %520  ;;  %v851_v32 = vmul.f32 %v2268_v34, %v2349_v20 }
  0xb4   : > { %926 = vbcast.lane.b32.xlu0 %v924_v33, 256  ;;  %763 = vbcast.lane.b32.xlu1 %v757_v43, 264  ;;  %v2319_v63 = vpop.permute.xlu1 %527  ;;  %v667_v33 = vmul.f32 %v2268_v34, %v2352_v26 }
  0xb8   : > { %381 = vbcast.lane.b32.xlu0 %v379_v44, 256  ;;  %963 = vbcast.lane.b32.xlu1 %v957_v45, 264  ;;  %v2322_v4 = vpop.permute.xlu1 %531 }
  0xbc   : > { %385 = vbcast.lane.b32.xlu0 %v379_v44, 264  ;;  %774 = vbcast.lane.b32.xlu1 %v768_v47, 264  ;;  %v2327_v10 = vpop.permute.xlu1 %538  ;;  %v668_v44 = vmul.f32 %v2271_v36, %v2352_v26 }
  0xc0   : > { %737 = vbcast.lane.b32.xlu0 %v735_v35, 256  ;;  %974 = vbcast.lane.b32.xlu1 %v968_v49, 264  ;;  %v2330_v14 = vpop.permute.xlu1 %542 }
  0xc4   : > { %937 = vbcast.lane.b32.xlu0 %v935_v38, 256  ;;  %785 = vbcast.lane.b32.xlu1 %v779_v50, 264  ;;  %v2332_v16 = vpop.permute.xlu1 %549 }
  0xc8   : > { %392 = vbcast.lane.b32.xlu0 %v390_v53, 256  ;;  %985 = vbcast.lane.b32.xlu1 %v979_v54, 264  ;;  %v2337_v21 = vpop.permute.xlu1 %553 }
  0xcc   : > { %396 = vbcast.lane.b32.xlu0 %v390_v53, 264  ;;  %244 = vbcast.lane.b32.xlu1 %v2299_v55, 264  ;;  %v2380_v53 = vld [vmem:[%s3233_s2] ss:$0 sm:$0xff] }
  0xd0   : > { %748 = vbcast.lane.b32.xlu0 %v746_v39, 256  ;;  %255 = vbcast.lane.b32.xlu1 %v2305_v57, 264 }
  0xd4   : > { %948 = vbcast.lane.b32.xlu0 %v946_v41, 256  ;;  %266 = vbcast.lane.b32.xlu1 %v2311_v59, 264 }
  0xd8   : > { %403 = vbcast.lane.b32.xlu0 %v401_v62, 256  ;;  %273 = vbcast.lane.b32.xlu1 %v271_v60, 256 }
  0xdc   : > { %407 = vbcast.lane.b32.xlu0 %v401_v62, 264  ;;  %277 = vbcast.lane.b32.xlu1 %v271_v60, 264 }
  0xe0   : > { %759 = vbcast.lane.b32.xlu0 %v757_v43, 256  ;;  %284 = vbcast.lane.b32.xlu1 %v282_v2, 256 }
  0xe4   : > { %959 = vbcast.lane.b32.xlu0 %v957_v45, 256  ;;  %288 = vbcast.lane.b32.xlu1 %v282_v2, 264 }
  0xe8   : > { %414 = vbcast.lane.b32.xlu0 %v412_v8, 256  ;;  %295 = vbcast.lane.b32.xlu1 %v293_v6, 256 }
  0xec   : > { %418 = vbcast.lane.b32.xlu0 %v412_v8, 264  ;;  %299 = vbcast.lane.b32.xlu1 %v293_v6, 264 }
  0xf0   : > { %770 = vbcast.lane.b32.xlu0 %v768_v47, 256  ;;  %306 = vbcast.lane.b32.xlu1 %v304_v12, 256 }
  0xf4   : > { %970 = vbcast.lane.b32.xlu0 %v968_v49, 256  ;;  %310 = vbcast.lane.b32.xlu1 %v304_v12, 264 }
  0xf8   : > { %425 = vbcast.lane.b32.xlu0 %v423_v18, 256  ;;  %317 = vbcast.lane.b32.xlu1 %v315_v19, 256 }
  0xfa   : > { %v2339_v22 = vpop.permute.xlu0 %348 }
  0xfb   : > { %v651_v31 = vmul.f32 %v2339_v22, %v2349_v20 }
  0xfc   : > { %429 = vbcast.lane.b32.xlu0 %v423_v18, 264  ;;  %321 = vbcast.lane.b32.xlu1 %v315_v19, 264 }
  0xfd   : > { %v683_v45 = vadd.f32 %v667_v33, %v651_v31 }
  0xfe   : > { %v2344_v24 = vpop.permute.xlu0 %352  ;;  %v2346_v25 = vpop.permute.xlu1 %708 }
  0xff   : > { %3259 = vst [vmem:[#allocation12_spill] sm:$0xff] %v2344_v24  ;;  %v652_v35 = vmul.f32 %v2344_v24, %v2349_v20 }
 0x100   : > { %781 = vbcast.lane.b32.xlu0 %v779_v50, 256  ;;  %v788_v50 = vmul.f32 %v2346_v25, %v2358_v30 }
 0x101   : > { %v684_v49 = vadd.f32 %v668_v44, %v652_v35 }
 0x102   : > { %v705_v27 = vpop.permute.xlu0 %704  ;;  %v2354_v28 = vpop.permute.xlu1 %908 }
 0x103   : > { %v867_v29 = vmul.f32 %v705_v27, %v2352_v26  ;;  %v787_v37 = vmul.f32 %v705_v27, %v2358_v30  ;;  %v804_v2 = vadd.f32 %v788_v50, %v684_v49 }
 0x104   : > { %981 = vbcast.lane.b32.xlu0 %v979_v54, 256 }
 0x105   : > { %v883_v41 = vadd.f32 %v867_v29, %v851_v32  ;;  %v803_v52 = vadd.f32 %v787_v37, %v683_v45  ;;  %v820_v33 = vadd.f32 %v2380_v53, %v804_v2 }
 0x106   : > { %v905_v38 = vpop.permute.xlu0 %904  ;;  %v2369_v39 = vpop.permute.xlu1 %719 }
 0x107   : > { %v987_v43 = vmul.f32 %v905_v38, %v2358_v30  ;;  %v819_v12 = vadd.f32 %v2380_v53, %v803_v52 }
 0x108   : > { %240 = vbcast.lane.b32.xlu0 %v2299_v55, 256 }
 0x109   : > { %v1003_v47 = vadd.f32 %v987_v43, %v883_v41  ;;  %v835_v32 = vmax.f32 %v819_v12, 0.0  ;;  %v790_v41 = vmul.f32 %v2369_v39, %v2358_v30 }
 0x10a   : > { %v2382_v54 = vpop.permute.xlu0 %359  ;;  %v2384_v60 = vpop.permute.xlu1 %919 }
 0x10b   : > { %v1019_v62 = vadd.f32 %v2380_v53, %v1003_v47  ;;  %v653_v18 = vmul.f32 %v2382_v54, %v2349_v20  ;;  %v836_v47 = vmax.f32 %v820_v33, 0.0 }
 0x10c   : > { %251 = vbcast.lane.b32.xlu0 %v2305_v57, 256  ;;  %v670_v57 = vmul.f32 %v2280_v42, %v2352_v26 }
 0x10d   : > { %v1035_v55 = vmax.f32 %v1019_v62, 0.0  ;;  %v685_v35 = vadd.f32 %v669_v23, %v653_v18 }
 0x10e   : > { %v2388_v6 = vpop.permute.xlu0 %363  ;;  %v2390_v8 = vpop.permute.xlu1 %730 }
 0x10f   : > { %3260 = vst [vmem:[#allocation13_spill] sm:$0xff] %v2388_v6  ;;  %v654_v19 = vmul.f32 %v2388_v6, %v2349_v20  ;;  %1153 = vrot.lane.b32.xlu1 %v1035_v55, %s2168_s8 }
 0x110   : > { %262 = vbcast.lane.b32.xlu0 %v2311_v59, 256  ;;  %v853_v59 = vmul.f32 %v2277_v40, %v2349_v20 }
 0x111   : > { %v686_v27 = vadd.f32 %v670_v57, %v654_v19 }
 0x112   : > { %v716_v29 = vpop.permute.xlu0 %715  ;;  %v2403_v31 = vpop.permute.xlu1 %930 }
 0x113   : > { %v789_v37 = vmul.f32 %v716_v29, %v2358_v30  ;;  %v869_v38 = vmul.f32 %v716_v29, %v2352_v26  ;;  %v806_v49 = vadd.f32 %v790_v41, %v686_v27 }
 0x114   : > { %1089 = vrot.lane.b32.xlu0 %v835_v32, %s2169_s9 }
 0x115   : > { %v805_v43 = vadd.f32 %v789_v37, %v685_v35  ;;  %v885_v50 = vadd.f32 %v869_v38, %v853_v59  ;;  %v822_v19 = vadd.f32 %v2380_v53, %v806_v49  ;;  %v672_v37 = vmul.f32 %v2289_v48, %v2352_v26 }
 0x116   : > { %v916_v44 = vpop.permute.xlu0 %915  ;;  %v2413_v45 = vpop.permute.xlu1 %741  ;;  %v671_v38 = vmul.f32 %v2286_v46, %v2352_v26 }
 0x117   : > { %v989_v52 = vmul.f32 %v916_v44, %v2358_v30  ;;  %v821_v62 = vadd.f32 %v2380_v53, %v805_v43  ;;  %v838_v32 = vmax.f32 %v822_v19, 0.0 }
 0x118   : > { %1091 = vrot.lane.b32.xlu0 %v836_v47, %s2169_s9 }
 0x119   : > { %v1005_v55 = vadd.f32 %v989_v52, %v885_v50  ;;  %v837_v18 = vmax.f32 %v821_v62, 0.0  ;;  %v792_v50 = vmul.f32 %v2390_v8, %v2358_v30  ;;  %v855_v52 = vmul.f32 %v2286_v46, %v2349_v20 }
 0x11a   : > { %v2418_v2 = vpop.permute.xlu0 %370  ;;  %v2420_v12 = vpop.permute.xlu1 %941 }
 0x11b   : > { %3261 = vst [vmem:[#allocation14_spill] sm:$0xff] %v2418_v2  ;;  %v1021_v57 = vadd.f32 %v2380_v53, %v1005_v55  ;;  %v655_v33 = vmul.f32 %v2418_v2, %v2349_v20 }
 0x11c   : > { %1093 = vrot.lane.b32.xlu0 %v837_v18, %s2169_s9 }
 0x11d   : > { %v1037_v23 = vmax.f32 %v1021_v57, 0.0  ;;  %v687_v44 = vadd.f32 %v671_v38, %v655_v33 }
 0x11e   : > { %v2425_v27 = vpop.permute.xlu0 %374  ;;  %v2427_v29 = vpop.permute.xlu1 %752 }
 0x11f   : > { %3262 = vst [vmem:[#allocation15_spill] sm:$0xff] %v2425_v27  ;;  %v656_v35 = vmul.f32 %v2425_v27, %v2349_v20  ;;  %1157 = vrot.lane.b32.xlu1 %v1037_v23, %s2168_s8 }
 0x120   : > { %1095 = vrot.lane.b32.xlu0 %v838_v32, %s2169_s9 }
 0x121   : > { %v688_v41 = vadd.f32 %v672_v37, %v656_v35 }
 0x122   : > { %v727_v59 = vpop.permute.xlu0 %726  ;;  %v2439_v43 = vpop.permute.xlu1 %952 }
 0x123   : > { %v791_v47 = vmul.f32 %v727_v59, %v2358_v30  ;;  %v871_v49 = vmul.f32 %v727_v59, %v2352_v26  ;;  %v808_v19 = vadd.f32 %v792_v50, %v688_v41 }
 0x125   : > { %v807_v62 = vadd.f32 %v791_v47, %v687_v44  ;;  %v887_v57 = vadd.f32 %v871_v49, %v855_v52  ;;  %v824_v59 = vadd.f32 %v2380_v53, %v808_v19 }
 0x126   : > { %v927_v55 = vpop.permute.xlu0 %926  ;;  %v2447_v18 = vpop.permute.xlu1 %763 }
 0x127   : > { %v991_v23 = vmul.f32 %v927_v55, %v2358_v30  ;;  %v823_v32 = vadd.f32 %v2380_v53, %v807_v62  ;;  %v840_v49 = vmax.f32 %v824_v59, 0.0  ;;  %v674_v62 = vmul.f32 %v2301_v56, %v2352_v26 }
 0x128   : > { %v857_v59 = vmul.f32 %v2293_v51, %v2349_v20 }
 0x129   : > { %v1007_v33 = vadd.f32 %v991_v23, %v887_v57  ;;  %v839_v38 = vmax.f32 %v823_v32, 0.0 }
 0x12a   : > { %v2451_v35 = vpop.permute.xlu0 %381  ;;  %v2453_v37 = vpop.permute.xlu1 %963 }
 0x12b   : > { %3263 = vst [vmem:[#allocation16_spill] sm:$0xff] %v2451_v35  ;;  %v1023_v0 = vadd.f32 %v2380_v53, %v1007_v33  ;;  %1097 = vrot.lane.b32.xlu0 %v839_v38, %s2169_s9  ;;  %v657_v50 = vmul.f32 %v2451_v35, %v2349_v20  ;;  %v794_v38 = vmul.f32 %v2413_v45, %v2358_v30 }
 0x12d   : > { %v1039_v44 = vmax.f32 %v1023_v0, 0.0  ;;  %v673_v0 = vmul.f32 %v2293_v51, %v2352_v26 }
 0x12e   : > { %v2458_v47 = vpop.permute.xlu0 %385  ;;  %v2460_v41 = vpop.permute.xlu1 %774 }
 0x12f   : > { %3264 = vst [vmem:[#allocation17_spill] sm:$0xff] %v2458_v47  ;;  %v658_v52 = vmul.f32 %v2458_v47, %v2349_v20  ;;  %1161 = vrot.lane.b32.xlu1 %v1039_v44, %s2168_s8  ;;  %1099 = vrot.lane.b32.xlu0 %v840_v49, %s2169_s9  ;;  %v689_v23 = vadd.f32 %v673_v0, %v657_v50 }
 0x131   : > { %v690_v55 = vadd.f32 %v674_v62, %v658_v52 }
 0x132   : > { %v738_v19 = vpop.permute.xlu0 %737  ;;  %v2472_v57 = vpop.permute.xlu1 %974 }
 0x133   : > { %v793_v32 = vmul.f32 %v738_v19, %v2358_v30  ;;  %v873_v33 = vmul.f32 %v738_v19, %v2352_v26  ;;  %v810_v47 = vadd.f32 %v794_v38, %v690_v55  ;;  %v676_v38 = vmul.f32 %v2315_v61, %v2352_v26 }
 0x135   : > { %v809_v44 = vadd.f32 %v793_v32, %v689_v23  ;;  %v889_v52 = vadd.f32 %v873_v33, %v857_v59  ;;  %v826_v46 = vadd.f32 %v2380_v53, %v810_v47 }
 0x136   : > { %v938_v49 = vpop.permute.xlu0 %937  ;;  %v2480_v17 = vpop.permute.xlu1 %785 }
 0x137   : > { %v993_v62 = vmul.f32 %v938_v49, %v2358_v30  ;;  %v825_v50 = vadd.f32 %v2380_v53, %v809_v44  ;;  %v842_v33 = vmax.f32 %v826_v46, 0.0  ;;  %v796_v46 = vmul.f32 %v2427_v29, %v2358_v30 }
 0x139   : > { %v1009_v0 = vadd.f32 %v993_v62, %v889_v52  ;;  %v841_v35 = vmax.f32 %v825_v50, 0.0 }
 0x13a   : > { %v2484_v27 = vpop.permute.xlu0 %392  ;;  %v2486_v19 = vpop.permute.xlu1 %985 }
 0x13b   : > { %v1025_v51 = vadd.f32 %v2380_v53, %v1009_v0  ;;  %1101 = vrot.lane.b32.xlu0 %v841_v35, %s2169_s9  ;;  %v659_v59 = vmul.f32 %v2484_v27, %v2349_v20  ;;  %v1246_v0 = vld [vmem:[%s3234_s3 + $0x58] sm:$0xff] }
 0x13c   : > { %1972 = vmatprep.subr.mxu0 %v1246_v0  ;;  %2020 = vmatprep.subr.mxu1 %v1246_v0 }
 0x13d   : > { %v1041_v23 = vmax.f32 %v1025_v51, 0.0  ;;  %v675_v51 = vmul.f32 %v2307_v58, %v2352_v26  ;;  %1973 = vmatpush3.msra.mxu0 %v1246_v0  ;;  %2032 = vmatpush3.msra.mxu1 %v1246_v0 }
 0x13e   : > { %v2491_v32 = vpop.permute.xlu0 %396  ;;  %v2493_v55 = vpop.permute.xlu1 %244 }
 0x13f   : > { %3265 = vst [vmem:[#allocation18_spill] sm:$0xff] %v2491_v32  ;;  %v660_v44 = vmul.f32 %v2491_v32, %v2349_v20  ;;  %1165 = vrot.lane.b32.xlu1 %v1041_v23, %s2168_s8  ;;  %1103 = vrot.lane.b32.xlu0 %v842_v33, %s2169_s9  ;;  %v691_v52 = vadd.f32 %v675_v51, %v659_v59 }
 0x140   : > { %v859_v23 = vmul.f32 %v2307_v58, %v2349_v20 }
 0x141   : > { %v692_v35 = vadd.f32 %v676_v38, %v660_v44 }
 0x142   : > { %v749_v47 = vpop.permute.xlu0 %748  ;;  %v2505_v49 = vpop.permute.xlu1 %255 }
 0x143   : > { %3266 = vst [vmem:[#allocation19_spill] sm:$0xff] %v2505_v49  ;;  %v795_v62 = vmul.f32 %v749_v47, %v2358_v30  ;;  %v875_v50 = vmul.f32 %v749_v47, %v2352_v26  ;;  %v812_v38 = vadd.f32 %v796_v46, %v692_v35  ;;  %v1245_v46 = vld [vmem:[%s3234_s3 + $0x50] sm:$0xff] }
 0x144   : > { %1974 = vmatprep.subr.mxu0 %v1245_v46  ;;  %2021 = vmatprep.subr.mxu1 %v1245_v46 }
 0x145   : > { %v811_v33 = vadd.f32 %v795_v62, %v691_v52  ;;  %v891_v59 = vadd.f32 %v875_v50, %v859_v23  ;;  %v828_v2 = vadd.f32 %v2380_v53, %v812_v38  ;;  %1975 = vmatpush3.msra.mxu0 %v1245_v46  ;;  %v1244_v23 = vld [vmem:[%s3234_s3 + $0x48] sm:$0xff]  ;;  %2033 = vmatpush3.msra.mxu1 %v1245_v46 }
 0x146   : > { %v949_v44 = vpop.permute.xlu0 %948  ;;  %v2516_v32 = vpop.permute.xlu1 %266  ;;  %1976 = vmatprep.subr.mxu0 %v1244_v23  ;;  %2022 = vmatprep.subr.mxu1 %v1244_v23  ;;  %v677_v38 = vmul.f32 %v2319_v63, %v2352_v26 }
 0x147   : > { %3267 = vst [vmem:[#allocation20_spill] sm:$0xff] %v2516_v32  ;;  %v995_v51 = vmul.f32 %v949_v44, %v2358_v30  ;;  %v827_v47 = vadd.f32 %v2380_v53, %v811_v33  ;;  %v844_v62 = vmax.f32 %v828_v2, 0.0  ;;  %v1243_v33 = vld [vmem:[%s3234_s3 + $0x40] sm:$0xff]  ;;  %v798_v44 = vmul.f32 %v2447_v18, %v2358_v30  ;;  %1977 = vmatpush3.msra.mxu0 %v1244_v23 }
 0x148   : > { %2034 = vmatpush3.msra.mxu1 %v1244_v23  ;;  %1978 = vmatprep.subr.mxu0 %v1243_v33  ;;  %v1241_v23 = vld [vmem:[%s3234_s3 + $0x30] sm:$0xff] }
 0x149   : > { %v1011_v6 = vadd.f32 %v995_v51, %v891_v59  ;;  %v843_v49 = vmax.f32 %v827_v47, 0.0  ;;  %2023 = vmatprep.subr.mxu1 %v1243_v33  ;;  %1979 = vmatpush3.msra.mxu0 %v1243_v33 }
 0x14a   : > { %v2521_v40 = vpop.permute.xlu0 %403  ;;  %v2523_v24 = vpop.permute.xlu1 %273  ;;  %2035 = vmatpush3.msra.mxu1 %v1243_v33 }
 0x14b   : > { %v1027_v35 = vadd.f32 %v2380_v53, %v1011_v6  ;;  %1105 = vrot.lane.b32.xlu0 %v843_v49, %s2169_s9  ;;  %v678_v6 = vmul.f32 %v2322_v4, %v2352_v26  ;;  %v661_v49 = vmul.f32 %v2521_v40, %v2349_v20 }
 0x14d   : > { %v1043_v52 = vmax.f32 %v1027_v35, 0.0  ;;  %v693_v35 = vadd.f32 %v677_v38, %v661_v49  ;;  %v1240_v38 = vld [vmem:[%s3234_s3 + $0x28] sm:$0xff] }
 0x14e   : > { %v2530_v50 = vpop.permute.xlu0 %407  ;;  %v2532_v0 = vpop.permute.xlu1 %277 }
 0x14f   : > { %3268 = vst [vmem:[#allocation21_spill] sm:$0xff] %v2530_v50  ;;  %3269 = vst [vmem:[#allocation22_spill] sm:$0xff] %v2532_v0  ;;  %v662_v2 = vmul.f32 %v2530_v50, %v2349_v20  ;;  %1169 = vrot.lane.b32.xlu1 %v1043_v52, %s2168_s8  ;;  %1107 = vrot.lane.b32.xlu0 %v844_v62, %s2169_s9  ;;  %v1242_v50 = vld [vmem:[%s3234_s3 + $0x38] sm:$0xff] }
 0x150   : > { %1980 = vmatprep.subr.mxu0 %v1242_v50  ;;  %2024 = vmatprep.subr.mxu1 %v1242_v50 }
 0x151   : > { %v694_v59 = vadd.f32 %v678_v6, %v662_v2  ;;  %v861_v6 = vmul.f32 %v2319_v63, %v2349_v20  ;;  %1981 = vmatpush3.msra.mxu0 %v1242_v50  ;;  %2036 = vmatpush3.msra.mxu1 %v1242_v50  ;;  %v852_v50 = vmul.f32 %v2271_v36, %v2349_v20 }
 0x152   : > { %v760_v51 = vpop.permute.xlu0 %759  ;;  %v2552_v47 = vpop.permute.xlu1 %284  ;;  %1982 = vmatprep.subr.mxu0 %v1241_v23  ;;  %2025 = vmatprep.subr.mxu1 %v1241_v23 }
 0x153   : > { %v814_v46 = vadd.f32 %v798_v44, %v694_v59  ;;  %v797_v52 = vmul.f32 %v760_v51, %v2358_v30  ;;  %v877_v62 = vmul.f32 %v760_v51, %v2352_v26  ;;  %1983 = vmatpush3.msra.mxu0 %v1241_v23  ;;  %2037 = vmatpush3.msra.mxu1 %v1241_v23  ;;  %v1237_v23 = vld [vmem:[%s3234_s3 + $0x10] sm:$0xff] }
 0x154   : > { %1984 = vmatprep.subr.mxu0 %v1240_v38  ;;  %2026 = vmatprep.subr.mxu1 %v1240_v38 }
 0x155   : > { %v813_v49 = vadd.f32 %v797_v52, %v693_v35  ;;  %v830_v2 = vadd.f32 %v2380_v53, %v814_v46  ;;  %v893_v51 = vadd.f32 %v877_v62, %v861_v6  ;;  %v1239_v35 = vld [vmem:[%s3234_s3 + $0x20] sm:$0xff]  ;;  %1985 = vmatpush3.msra.mxu0 %v1240_v38  ;;  %v868_v62 = vmul.f32 %v2346_v25, %v2352_v26 }
 0x156   : > { %v960_v44 = vpop.permute.xlu0 %959  ;;  %v2568_v59 = vpop.permute.xlu1 %288  ;;  %1986 = vmatprep.subr.mxu0 %v1239_v35  ;;  %v988_v25 = vmul.f32 %v2354_v28, %v2358_v30  ;;  %2038 = vmatpush3.msra.mxu1 %v1240_v38  ;;  %v854_v28 = vmul.f32 %v2280_v42, %v2349_v20  ;;  %v680_v38 = vmul.f32 %v2330_v14, %v2352_v26 }
 0x157   : > { %3270 = vst [vmem:[#allocation23_spill] sm:$0xff] %v2568_v59  ;;  %v997_v0 = vmul.f32 %v960_v44, %v2358_v30  ;;  %v846_v33 = vmax.f32 %v830_v2, 0.0  ;;  %v829_v32 = vadd.f32 %v2380_v53, %v813_v49  ;;  %v1238_v49 = vld [vmem:[%s3234_s3 + $0x18] sm:$0xff]  ;;  %v870_v44 = vmul.f32 %v2369_v39, %v2352_v26  ;;  %1987 = vmatpush3.msra.mxu0 %v1239_v35 }
 0x158   : > { %1988 = vmatprep.subr.mxu0 %v1238_v49  ;;  %v990_v39 = vmul.f32 %v2384_v60, %v2358_v30  ;;  %2027 = vmatprep.subr.mxu1 %v1239_v35  ;;  %v800_v42 = vmul.f32 %v2460_v41, %v2358_v30 }
 0x159   : > { %v1013_v46 = vadd.f32 %v997_v0, %v893_v51  ;;  %1111 = vrot.lane.b32.xlu1 %v846_v33, %s2169_s9  ;;  %v845_v52 = vmax.f32 %v829_v32, 0.0  ;;  %v445_v0 = vmul.f32 %v2352_v26, %v2521_v40  ;;  %v569_v40 = vmul.f32 %v2358_v30, %v2319_v63  ;;  %1989 = vmatpush3.msra.mxu0 %v1238_v49  ;;  %v1236_v63 = vld [vmem:[%s3234_s3 + $0x8] sm:$0xff] }
 0x15a   : > { %v415_v6 = vpop.permute.xlu0 %414  ;;  %v296_v2 = vpop.permute.xlu1 %295  ;;  %1990 = vmatprep.subr.mxu0 %v1237_v23  ;;  %2039 = vmatpush3.msra.mxu1 %v1239_v35 }
 0x15b   : > { %v337_v32 = vmul.f32 %v2349_v20, %v296_v2  ;;  %1109 = vrot.lane.b32.xlu0 %v845_v52, %s2169_s9  ;;  %v1029_v51 = vadd.f32 %v2380_v53, %v1013_v46  ;;  %v884_v52 = vadd.f32 %v868_v62, %v852_v50  ;;  %v679_v50 = vmul.f32 %v2327_v10, %v2352_v26 }
 0x15c   : > { %1991 = vmatpush3.msra.mxu0 %v1237_v23  ;;  %2028 = vmatprep.subr.mxu1 %v1238_v49 }
 0x15d   : > { %v461_v33 = vadd.f32 %v445_v0, %v337_v32  ;;  %v1045_v59 = vmax.f32 %v1029_v51, 0.0  ;;  %v663_v0 = vmul.f32 %v415_v6, %v2349_v20  ;;  %v1004_v32 = vadd.f32 %v988_v25, %v884_v52  ;;  %1992 = vmatprep.subr.mxu0 %v1236_v63  ;;  %2040 = vmatpush3.msra.mxu1 %v1238_v49 }
 0x15e   : > { %v2601_v46 = vpop.permute.xlu0 %418  ;;  %v2603_v2 = vpop.permute.xlu1 %299  ;;  %v886_v51 = vadd.f32 %v870_v44, %v854_v28  ;;  %v2627_v28 = vadd.s32 8, %v2215_v1  ;;  %1993 = vmatpush3.msra.mxu0 %v1236_v63  ;;  %v872_v52 = vmul.f32 %v2390_v8, %v2352_v26  ;;  %v992_v8 = vmul.f32 %v2403_v31, %v2358_v30  ;;  %2029 = vmatprep.subr.mxu1 %v1237_v23 }
 0x15f   : > { %3271 = vst [vmem:[#allocation24_spill] sm:$0xff] %v2601_v46  ;;  %3272 = vst [vmem:[#allocation25_spill] sm:$0xff] %v2603_v2  ;;  %v585_v62 = vadd.f32 %v569_v40, %v461_v33  ;;  %v664_v60 = vmul.f32 %v2601_v46, %v2349_v20  ;;  %1173 = vrot.lane.b32.xlu0 %v1045_v59, %s2168_s8  ;;  %v1235_v2 = vld [vmem:[%s3234_s3] sm:$0xff]  ;;  %v856_v46 = vmul.f32 %v2289_v48, %v2349_v20 }
 0x160   : > { %v1006_v25 = vadd.f32 %v990_v39, %v886_v51  ;;  %1994 = vmatprep.subr.mxu0 %v1235_v2  ;;  %v1020_v48 = vadd.f32 %v2380_v53, %v1004_v32  ;;  %2041 = vmatpush3.msra.mxu1 %v1237_v23  ;;  %v874_v32 = vmul.f32 %v2413_v45, %v2352_v26  ;;  %vm1052_vm5 = vcmp.ge.s32.totalorder %v2627_v28, 15 }
 0x161   : > { %v696_v40 = vadd.f32 %v680_v38, %v664_v60  ;;  %v607_v33 = vadd.f32 %v2380_v53, %v585_v62  ;;  %v695_v38 = vadd.f32 %v679_v50, %v663_v0  ;;  %v447_v62 = vmul.f32 %v2352_v26, %v415_v6  ;;  %1995 = vmatpush3.msra.mxu0 %v1235_v2 }
 0x162   : > { %v2624_v44 = vpop.permute.xlu0 %770  ;;  %v307_v59 = vpop.permute.xlu1 %306  ;;  %v571_v50 = vmul.f32 %v2358_v30, %v2327_v10  ;;  %v1022_v6 = vadd.f32 %v2380_v53, %v1006_v25  ;;  %v888_v31 = vadd.f32 %v872_v52, %v856_v46  ;;  %2030 = vmatprep.subr.mxu1 %v1236_v63  ;;  %v858_v25 = vmul.f32 %v2301_v56, %v2349_v20 }
 0x163   : > { %v816_v60 = vadd.f32 %v800_v42, %v696_v40  ;;  %v799_v35 = vmul.f32 %v2624_v44, %v2358_v30  ;;  %v339_v39 = vmul.f32 %v2349_v20, %v307_v59  ;;  %v623_v51 = vmax.f32 %v607_v33, 0.0  ;;  %2042 = vmatpush3.msra.mxu1 %v1236_v63 }
 0x164   : > { %v1036_v46 = vmax.f32 %v1020_v48, 0.0  ;;  %2031 = vmatprep.subr.mxu1 %v1235_v2  ;;  %v860_v45 = vmul.f32 %v2315_v61, %v2349_v20  ;;  %v862_v52 = vmul.f32 %v2322_v4, %v2349_v20 }
 0x165   : > { %v815_v0 = vadd.f32 %v799_v35, %v695_v38  ;;  %v832_v42 = vadd.f32 %v2380_v53, %v816_v60  ;;  %v463_v40 = vadd.f32 %v447_v62, %v339_v39  ;;  %v2649_v49 = vsel %vm629_vm4, 0.0, %v623_v51  ;;  %2043 = vmatpush3.msra.mxu1 %v1235_v2 }
 0x166   : > { %v2643_v59 = vpop.permute.xlu0 %970  ;;  %v2645_v33 = vpop.permute.xlu1 %310  ;;  %3273 = vst [vmem:[#allocation26_spill] sm:$0xff] %v2649_v49  ;;  %v1008_v62 = vadd.f32 %v992_v8, %v888_v31  ;;  %v994_v39 = vmul.f32 %v2420_v12, %v2358_v30  ;;  %v878_v51 = vmul.f32 %v2447_v18, %v2352_v26  ;;  %v573_v12 = vmul.f32 %v2358_v30, %v2332_v16 }
 0x167   : > { %v831_v38 = vadd.f32 %v2380_v53, %v815_v0  ;;  %v848_v60 = vmax.f32 %v832_v42, 0.0  ;;  %v587_v35 = vadd.f32 %v571_v50, %v463_v40  ;;  %v890_v42 = vadd.f32 %v874_v32, %v858_v25 }
 0x168   : > { %v1038_v50 = vmax.f32 %v1022_v6, 0.0  ;;  %v876_v40 = vmul.f32 %v2427_v29, %v2352_v26  ;;  %v998_v18 = vmul.f32 %v2453_v37, %v2358_v30  ;;  %v1024_v2 = vadd.f32 %v2380_v53, %v1008_v62 }
 0x169   : > { %1115 = vrot.lane.b32.xlu1 %v848_v60, %s2169_s9  ;;  %v847_v23 = vmax.f32 %v831_v38, 0.0  ;;  %v609_v8 = vadd.f32 %v2380_v53, %v587_v35  ;;  %v1010_v60 = vadd.f32 %v994_v39, %v890_v42  ;;  %v996_v32 = vmul.f32 %v2439_v43, %v2358_v30 }
 0x16a   : > { %v426_v0 = vpop.permute.xlu0 %425  ;;  %v318_v63 = vpop.permute.xlu1 %317  ;;  %v1058_v25 = vsel %vm1052_vm5, 0.0, %v1036_v46  ;;  %v894_v35 = vadd.f32 %v878_v51, %v862_v52  ;;  %v880_v6 = vmul.f32 %v2460_v41, %v2352_v26  ;;  %v864_v62 = vmul.f32 %v2330_v14, %v2349_v20 }
 0x16b   : > { %v449_v48 = vmul.f32 %v2352_v26, %v426_v0  ;;  %1113 = vrot.lane.b32.xlu0 %v847_v23, %s2169_s9  ;;  %v341_v31 = vmul.f32 %v2349_v20, %v318_v63  ;;  %v625_v38 = vmax.f32 %v609_v8, 0.0  ;;  %v682_v43 = vmul.f32 %v2337_v21, %v2352_v26 }
 0x16c   : > { %v1060_v41 = vsel %vm1052_vm5, 0.0, %v1038_v50  ;;  %v892_v46 = vadd.f32 %v876_v40, %v860_v45  ;;  %v1014_v52 = vadd.f32 %v998_v18, %v894_v35  ;;  %v1000_v51 = vmul.f32 %v2472_v57, %v2358_v30 }
 0x16d   : > { %v465_v29 = vadd.f32 %v449_v48, %v341_v31  ;;  %v2687_v37 = vsel %vm629_vm4, 0.0, %v625_v38  ;;  %v1026_v8 = vadd.f32 %v2380_v53, %v1010_v60  ;;  %v802_v42 = vmul.f32 %v2480_v17, %v2358_v30 }
 0x16e   : > { %v2683_v23 = vpop.permute.xlu0 %429  ;;  %3274 = vst [vmem:[#allocation27_spill] sm:$0xff] %v2687_v37  ;;  %v1040_v31 = vmax.f32 %v1024_v2, 0.0  ;;  %v1012_v38 = vadd.f32 %v996_v32, %v892_v46  ;;  %v896_v37 = vadd.f32 %v880_v6, %v864_v62  ;;  %v866_v50 = vmul.f32 %v2337_v21, %v2349_v20 }
 0x16f   : > { %v666_v39 = vmul.f32 %v2683_v23, %v2349_v20  ;;  %1155 = vrot.lane.b32.xlu0 %v1058_v25, %s2168_s8  ;;  %v589_v63 = vadd.f32 %v573_v12, %v465_v29  ;;  %v882_v25 = vmul.f32 %v2480_v17, %v2352_v26  ;;  %v879_v57 = vmul.f32 %v2624_v44, %v2352_v26 }
 0x170   : > { %v1030_v40 = vadd.f32 %v2380_v53, %v1014_v52  ;;  %v1016_v18 = vadd.f32 %v1000_v51, %v896_v37  ;;  %v1002_v2 = vmul.f32 %v2486_v19, %v2358_v30  ;;  %v863_v17 = vmul.f32 %v2327_v10, %v2349_v20 }
 0x171   : > { %v698_v48 = vadd.f32 %v682_v43, %v666_v39  ;;  %v611_v45 = vadd.f32 %v2380_v53, %v589_v63  ;;  %v999_v32 = vmul.f32 %v2643_v59, %v2358_v30  ;;  %v1062_v35 = vsel %vm1052_vm5, 0.0, %v1040_v31 }
 0x172   : > { %v782_v49 = vpop.permute.xlu0 %781  ;;  %v1028_v6 = vadd.f32 %v2380_v53, %v1012_v38  ;;  %v898_v29 = vadd.f32 %v882_v25, %v866_v50  ;;  %v1042_v37 = vmax.f32 %v1026_v8, 0.0  ;;  %v895_v43 = vadd.f32 %v879_v57, %v863_v17 }
 0x173   : > { %v818_v12 = vadd.f32 %v802_v42, %v698_v48  ;;  %1159 = vrot.lane.b32.xlu0 %v1060_v41, %s2168_s8  ;;  %v627_v60 = vmax.f32 %v611_v45, 0.0  ;;  %v665_v10 = vmul.f32 %v426_v0, %v2349_v20  ;;  %v1032_v39 = vadd.f32 %v2380_v53, %v1016_v18 }
 0x174   : > { %v1018_v41 = vadd.f32 %v1002_v2, %v898_v29  ;;  %v1046_v46 = vmax.f32 %v1030_v40, 0.0  ;;  %v681_v52 = vmul.f32 %v2332_v16, %v2352_v26  ;;  %v1015_v51 = vadd.f32 %v999_v32, %v895_v43 }
 0x175   : > { %v834_v44 = vadd.f32 %v2380_v53, %v818_v12  ;;  %v2724_v19 = vsel %vm629_vm4, 0.0, %v627_v60  ;;  %v801_v63 = vmul.f32 %v782_v49, %v2358_v30  ;;  %v559_v8 = vmul.f32 %v2358_v30, %v2268_v34 }
 0x176   : > { %v982_v62 = vpop.permute.xlu0 %981  ;;  %v1064_v0 = vsel %vm1052_vm5, 0.0, %v1042_v37  ;;  %v1044_v48 = vmax.f32 %v1028_v6, 0.0  ;;  %v435_v31 = vmul.f32 %v2352_v26, %v2339_v22  ;;  %v697_v38 = vadd.f32 %v681_v52, %v665_v10 }
 0x177   : > { %1163 = vrot.lane.b32.xlu0 %v1062_v35, %s2168_s8  ;;  %v850_v59 = vmax.f32 %v834_v44, 0.0  ;;  %v881_v25 = vmul.f32 %v782_v49, %v2352_v26  ;;  %v865_v50 = vmul.f32 %v2332_v16, %v2349_v20  ;;  %v1034_v34 = vadd.f32 %v2380_v53, %v1018_v41  ;;  %v2140_v44 = vld [vmem:[%s2220_s24] sm:$0xff] }
 0x178   : > { %v1068_v57 = vsel %vm1052_vm5, 0.0, %v1046_v46  ;;  %v1048_v12 = vmax.f32 %v1032_v39, 0.0  ;;  %v1031_v40 = vadd.f32 %v2380_v53, %v1015_v51  ;;  %v817_v22 = vadd.f32 %v801_v63, %v697_v38  ;;  %v2765_v39 = vpop.permute.xlu1 %321 }
 0x179   : > { %1119 = vrot.lane.b32.xlu1 %v850_v59, %s2169_s9  ;;  %v1001_v18 = vmul.f32 %v982_v62, %v2358_v30  ;;  %v1066_v16 = vsel %vm1052_vm5, 0.0, %v1044_v48  ;;  %v897_v60 = vadd.f32 %v881_v25, %v865_v50  ;;  %v1050_v35 = vmax.f32 %v1034_v34, 0.0 }
 0x17a   : > { %v241_v42 = vpop.permute.xlu0 %240  ;;  %v1070_v32 = vsel %vm1052_vm5, 0.0, %v1048_v12  ;;  %v2044_v6 = vtrunc.f32 %v2140_v44  ;;  %v1047_v29 = vmax.f32 %v1031_v40, 0.0  ;;  %v833_v62 = vadd.f32 %v2380_v53, %v817_v22 }
 0x17b   : > { %v327_v45 = vmul.f32 %v2349_v20, %v241_v42  ;;  %1167 = vrot.lane.b32.xlu0 %v1064_v0, %s2168_s8  ;;  %v1017_v37 = vadd.f32 %v1001_v18, %v897_v60  ;;  %v1072_v46 = vsel %vm1052_vm5, 0.0, %v1050_v35  ;;  %v450_v1 = vmul.f32 %v2352_v26, %v2683_v23 }
 0x17c   : > { %v2763_v59 = vcvt.f32.s32 %v2044_v6  ;;  %v849_v63 = vmax.f32 %v833_v62, 0.0  ;;  %v437_v62 = vmul.f32 %v2352_v26, %v2382_v54  ;;  %v3278_v54 = vld [vmem:[#allocation19_spill] sm:$0xff] }
 0x17d   : > { %v451_v49 = vadd.f32 %v435_v31, %v327_v45  ;;  %1175 = vrot.lane.b32.xlu1 %v1068_v57, %s2168_s8  ;;  %v1033_v52 = vadd.f32 %v2380_v53, %v1017_v37  ;;  %v335_v57 = vmul.f32 %v2349_v20, %v2552_v47  ;;  %v328_v37 = vmul.f32 %v2349_v20, %v2493_v55 }
 0x17e   : > { %v2750_v2 = vpop.permute.xlu0 %251  ;;  %v1610_v38 = vrot.slane %v2763_v59, %v2228_v5  ;;  %v1632_v25 = vrot.slane %v2763_v59, %v2236_v9  ;;  %v1643_v45 = vrot.slane %v2763_v59, %v2240_v11  ;;  %v1654_v5 = vrot.slane %v2763_v59, %v2244_v13 }
 0x17f   : > { %v575_v17 = vadd.f32 %v559_v8, %v451_v49  ;;  %1171 = vrot.lane.b32.xlu0 %v1066_v16, %s2168_s8  ;;  %v1599_v8 = vrot.slane %v2763_v59, %v2224_v3  ;;  %v1049_v31 = vmax.f32 %v1033_v52, 0.0  ;;  %v1621_v3 = vrot.slane %v2763_v59, %v2232_v7 }
 0x180   : > { %v2795_v7 = vrot.slane %v2763_v59, %v2248_v15  ;;  %v443_v13 = vmul.f32 %v2352_v26, %v2484_v27  ;;  %v567_v15 = vmul.f32 %v2358_v30, %v2307_v58 }
 0x181   : > { %1179 = vrot.lane.b32.xlu1 %v1070_v32, %s2168_s8  ;;  %v597_v43 = vadd.f32 %v2380_v53, %v575_v17  ;;  %v1154_v0 = vpop.permute.xlu1 %1153 }
 0x182   : > { %v2761_v10 = vpop.permute.xlu0 %262  ;;  %v459_v12 = vadd.f32 %v443_v13, %v335_v57  ;;  %v3281_v57 = vld [vmem:[#allocation9_spill] sm:$0xff] }
 0x183   : > { %1177 = vrot.lane.b32.xlu0 %v1047_v29, %s2168_s8  ;;  %v613_v41 = vmax.f32 %v597_v43, 0.0  ;;  %v329_v29 = vmul.f32 %v2349_v20, %v2750_v2  ;;  %v563_v13 = vmul.f32 %v2358_v30, %v3281_v57  ;;  %v3290_v57 = vld [vmem:[#allocation18_spill] sm:$0xff] }
 0x184   : > { %v583_v22 = vadd.f32 %v567_v15, %v459_v12  ;;  %v3282_v12 = vld [vmem:[#allocation16_spill] sm:$0xff] }
 0x185   : > { %1183 = vrot.lane.b32.xlu1 %v1072_v46, %s2168_s8  ;;  %v635_v51 = vsel %vm629_vm4, 0.0, %v613_v41  ;;  %v3275_v41 = vld [vmem:[#allocation12_spill] sm:$0xff]  ;;  %v453_v52 = vadd.f32 %v437_v62, %v329_v29  ;;  %v441_v15 = vmul.f32 %v2352_v26, %v3282_v12  ;;  %v3285_v62 = vld [vmem:[#allocation22_spill] sm:$0xff] }
 0x186   : > { %v1090_v42 = vpop.permute.xlu0 %1089  ;;  %v605_v16 = vadd.f32 %v2380_v53, %v583_v22  ;;  %v436_v46 = vmul.f32 %v2352_v26, %v3275_v41  ;;  %v3286_v41 = vld [vmem:[#allocation11_spill] sm:$0xff] }
 0x187   : > { %v1202_v48 = vsel %vm1201_vm6, %v635_v51, %v1090_v42  ;;  %1117 = vrot.lane.b32.xlu0 %v849_v63, %s2169_s9  ;;  %v331_v51 = vmul.f32 %v2349_v20, %v2761_v10  ;;  %v3276_v63 = vld [vmem:[#allocation7_spill] sm:$0xff]  ;;  %v3277_v42 = vld [vmem:[#allocation14_spill] sm:$0xff]  ;;  %v333_v10 = vmul.f32 %v2349_v20, %v2523_v24 }
 0x188   : > { %v1219_v28 = vsel %vm1218_vm7, %v1202_v48, %v1154_v0  ;;  %v621_v47 = vmax.f32 %v605_v16, 0.0  ;;  %v439_v2 = vmul.f32 %v2352_v26, %v3277_v42  ;;  %v452_v0 = vadd.f32 %v436_v46, %v328_v37  ;;  %v3288_v42 = vld [vmem:[#allocation17_spill] sm:$0xff] }
 0x189   : > { %1996 = vmatprep.mubr.msk.f32.mxu0 %vm1254_vm8, %v1219_v28  ;;  %1601 = vbcast.lane.b32.xlu1 %v1599_v8, 256  ;;  %v330_v48 = vmul.f32 %v2349_v20, %v3278_v54  ;;  %v560_v28 = vmul.f32 %v2358_v30, %v2271_v36  ;;  %v3283_v36 = vld [vmem:[#allocation15_spill] sm:$0xff]  ;;  %v457_v24 = vadd.f32 %v441_v15, %v333_v10 }
 0x18a   : > { %v2789_v50 = vpop.permute.xlu0 %1091  ;;  %v643_v35 = vsel %vm629_vm4, 0.0, %v621_v47  ;;  %v440_v47 = vmul.f32 %v2352_v26, %v3283_v36  ;;  %v334_v37 = vmul.f32 %v2349_v20, %v3285_v62  ;;  %v565_v46 = vmul.f32 %v2358_v30, %v3286_v41  ;;  %v3289_v10 = vld [vmem:[#allocation23_spill] sm:$0xff] }
 0x18b   : > { %1181 = vrot.lane.b32.xlu0 %v1049_v31, %s2168_s8  ;;  %v3279_v31 = vld [vmem:[#allocation13_spill] sm:$0xff]  ;;  %v576_v22 = vadd.f32 %v560_v28, %v452_v0 }
 0x18c   : > { %v581_v0 = vadd.f32 %v565_v46, %v457_v24 }
 0x18d   : > { %1612 = vbcast.lane.b32.xlu1 %v1610_v38, 256 }
 0x18e   : > { %v2797_v34 = vpop.permute.xlu0 %1093 }
 0x18f   : > { %1605 = vbcast.lane.b32.xlu0 %v1599_v8, 264  ;;  %v561_v8 = vmul.f32 %v2358_v30, %v3276_v63  ;;  %v3287_v63 = vld [vmem:[#allocation10_spill] sm:$0xff] }
 0x191   : > { %1616 = vbcast.lane.b32.xlu1 %v1610_v38, 264  ;;  %v2814_v49 = vpop.permute.xlu1 %1157  ;;  %v438_v38 = vmul.f32 %v2352_v26, %v3279_v31 }
 0x192   : > { %v2800_v9 = vpop.permute.xlu0 %1095 }
 0x193   : > { %1623 = vbcast.lane.b32.xlu0 %v1621_v3, 256  ;;  %v454_v16 = vadd.f32 %v438_v38, %v330_v48 }
 0x195   : > { %1627 = vbcast.lane.b32.xlu1 %v1621_v3, 264  ;;  %v577_v3 = vadd.f32 %v561_v8, %v453_v52  ;;  %v564_v8 = vmul.f32 %v2358_v30, %v3287_v63 }
 0x197   : > { %1634 = vbcast.lane.b32.xlu0 %v1632_v25, 256 }
 0x199   : > { %1638 = vbcast.lane.b32.xlu1 %v1632_v25, 264  ;;  %v455_v25 = vadd.f32 %v439_v2, %v331_v51  ;;  %v598_v51 = vadd.f32 %v2380_v53, %v576_v22  ;;  %v442_v2 = vmul.f32 %v2352_v26, %v3288_v42 }
 0x19b   : > { %1645 = vbcast.lane.b32.xlu0 %v1643_v45, 256  ;;  %v458_v38 = vadd.f32 %v442_v2, %v334_v37  ;;  %v3292_v37 = vld [vmem:[#allocation21_spill] sm:$0xff] }
 0x19c   : > { %v446_v41 = vmul.f32 %v2352_v26, %v3292_v37 }
 0x19d   : > { %1649 = vbcast.lane.b32.xlu1 %v1643_v45, 264  ;;  %v2802_v11 = vpop.permute.xlu0 %1097  ;;  %v3280_v45 = vld [vmem:[#allocation20_spill] sm:$0xff] }
 0x19f   : > { %1656 = vbcast.lane.b32.xlu0 %v1654_v5, 256 }
 0x1a1   : > { %1660 = vbcast.lane.b32.xlu1 %v1654_v5, 264  ;;  %v2808_v40 = vpop.permute.xlu0 %1099  ;;  %v2817_v60 = vpop.permute.xlu1 %1161  ;;  %v332_v5 = vmul.f32 %v2349_v20, %v3280_v45 }
 0x1a3   : > { %1667 = vbcast.lane.b32.xlu0 %v2795_v7, 256  ;;  %v456_v29 = vadd.f32 %v440_v47, %v332_v5  ;;  %v566_v5 = vmul.f32 %v2358_v30, %v2301_v56  ;;  %v2896_v56 = vld [vmem:[%s3233_s2] ss:$0 sm:$0xff] }
 0x1a5   : > { %v580_v31 = vadd.f32 %v564_v8, %v456_v29  ;;  %v582_v47 = vadd.f32 %v566_v5, %v458_v38 }
 0x1a7   : > { %v604_v42 = vadd.f32 %v2896_v56, %v582_v47 }
 0x1ad   : > { %v2812_v18 = vpop.permute.xlu0 %1101 }
 0x1b1   : > { %v2819_v17 = vpop.permute.xlu0 %1103  ;;  %v2821_v32 = vpop.permute.xlu1 %1165 }
 0x1bd   : > { %v1106_v27 = vpop.permute.xlu0 %1105 }
 0x1be   : > { %v1210_v58 = vsel %vm1201_vm6, %v643_v35, %v1106_v27  ;;  %v3284_v27 = vld [vmem:[#allocation8_spill] sm:$0xff] }
 0x1bf   : > { %v562_v35 = vmul.f32 %v2358_v30, %v3284_v27 }
 0x1c1   : > { %v1170_v44 = vpop.permute.xlu1 %1169  ;;  %v2834_v43 = vpop.permute.xlu0 %1107  ;;  %v578_v52 = vadd.f32 %v562_v35, %v454_v16  ;;  %v603_v16 = vadd.f32 %v2380_v53, %v581_v0  ;;  %v602_v35 = vadd.f32 %v2896_v56, %v580_v31  ;;  %v3293_v31 = vld [vmem:[#allocation24_spill] sm:$0xff] }
 0x1c2   : > { %v1227_v6 = vsel %vm1218_vm7, %v1210_v58, %v1170_v44  ;;  %v579_v58 = vadd.f32 %v563_v13, %v455_v25  ;;  %v599_v44 = vadd.f32 %v2380_v53, %v577_v3  ;;  %v336_v3 = vmul.f32 %v2349_v20, %v3289_v10 }
 0x1c3   : > { %2008 = vmatprep.mubr.msk.f32.mxu1 %vm1254_vm8, %v1227_v6  ;;  %v614_v25 = vmax.f32 %v598_v51, 0.0  ;;  %v600_v45 = vadd.f32 %v2380_v53, %v578_v52  ;;  %v444_v13 = vmul.f32 %v2352_v26, %v3290_v57  ;;  %v619_v51 = vmax.f32 %v603_v16, 0.0 }
 0x1c4   : > { %v615_v54 = vmax.f32 %v599_v44, 0.0  ;;  %v601_v48 = vadd.f32 %v2380_v53, %v579_v58  ;;  %v3291_v58 = vld [vmem:[#allocation25_spill] sm:$0xff]  ;;  %v618_v8 = vmax.f32 %v602_v35, 0.0  ;;  %v448_v38 = vmul.f32 %v2352_v26, %v3293_v31 }
 0x1c5   : > { %v1203_v12 = vsel %vm1201_vm6, %v614_v25, %v2789_v50  ;;  %v460_v24 = vadd.f32 %v444_v13, %v336_v3  ;;  %v338_v44 = vmul.f32 %v2349_v20, %v3291_v58  ;;  %v616_v29 = vmax.f32 %v600_v45, 0.0 }
 0x1c6   : > { %v637_v15 = vsel %vm629_vm4, 0.0, %v615_v54  ;;  %v617_v22 = vmax.f32 %v601_v48, 0.0  ;;  %v340_v54 = vmul.f32 %v2349_v20, %v2645_v33  ;;  %v1207_v10 = vsel %vm1201_vm6, %v618_v8, %v2808_v40 }
 0x1c7   : > { %v1204_v27 = vsel %vm1201_vm6, %v637_v15, %v2797_v34  ;;  %v568_v34 = vmul.f32 %v2358_v30, %v2315_v61  ;;  %v1205_v46 = vsel %vm1201_vm6, %v616_v29, %v2800_v9  ;;  %v462_v0 = vadd.f32 %v446_v41, %v338_v44 }
 0x1c8   : > { %v1221_v53 = vsel %vm1218_vm7, %v1204_v27, %v2814_v49  ;;  %v639_v52 = vsel %vm629_vm4, 0.0, %v617_v22  ;;  %v641_v33 = vsel %vm629_vm4, 0.0, %v619_v51  ;;  %v620_v25 = vmax.f32 %v604_v42, 0.0  ;;  %v2986_v42 = vld [vmem:[%s3235_s4] ss:$0 sm:$0xff] }
 0x1c9   : > { %v1206_v63 = vsel %vm1201_vm6, %v639_v52, %v2802_v11  ;;  %v584_v2 = vadd.f32 %v568_v34, %v460_v24  ;;  %v570_v11 = vmul.f32 %v2358_v30, %v2322_v4  ;;  %v464_v57 = vadd.f32 %v448_v38, %v340_v54 }
 0x1ca   : > { %v1223_v9 = vsel %vm1218_vm7, %v1206_v63, %v2817_v60  ;;  %v1208_v60 = vsel %vm1201_vm6, %v641_v33, %v2812_v18  ;;  %v572_v18 = vmul.f32 %v2358_v30, %v2330_v14  ;;  %v1209_v15 = vsel %vm1201_vm6, %v620_v25, %v2819_v17  ;;  %v3294_v17 = vld [vmem:[#allocation26_spill] sm:$0xff] }
 0x1cb   : > { %v1112_v62 = vpop.permute.xlu1 %1111  ;;  %v586_v5 = vadd.f32 %v570_v11, %v462_v0  ;;  %v1225_v4 = vsel %vm1218_vm7, %v1208_v60, %v2821_v32  ;;  %v606_v13 = vadd.f32 %v2896_v56, %v584_v2  ;;  %v574_v14 = vmul.f32 %v2358_v30, %v2337_v21  ;;  %v3295_v21 = vld [vmem:[#allocation27_spill] sm:$0xff] }
 0x1cd   : > { %v2846_v55 = vpop.permute.xlu0 %1109  ;;  %v608_v16 = vadd.f32 %v2896_v56, %v586_v5  ;;  %v622_v47 = vmax.f32 %v606_v13, 0.0 }
 0x1ce   : > { %v1212_v27 = vsel %vm1201_vm6, %v3294_v17, %v2846_v55 }
 0x1cf   : > { %v624_v24 = vmax.f32 %v608_v16, 0.0 }
 0x1d1   : > { %v2865_v6 = vpop.permute.xlu0 %1173 }
 0x1d2   : > { %v1229_v58 = vsel %vm1218_vm7, %v1212_v27, %v2865_v6 }
 0x1db   : > { %v1116_v48 = vpop.permute.xlu1 %1115 }
 0x1dd   : > { %v2877_v28 = vpop.permute.xlu0 %1113 }
 0x1de   : > { %v1214_v30 = vsel %vm1201_vm6, %v3295_v21, %v2877_v28 }
 0x1e1   : > { %v1156_v36 = vpop.permute.xlu0 %1155 }
 0x1e2   : > { %v1220_v50 = vsel %vm1218_vm7, %v1203_v12, %v1156_v36  ;;  %v342_v12 = vmul.f32 %v2349_v20, %v2765_v39  ;;  %v588_v36 = vadd.f32 %v572_v18, %v464_v57  ;;  %v1211_v20 = vsel %vm1201_vm6, %v622_v47, %v2834_v43 }
 0x1e3   : > { %1997 = vmatmul.mubr.msk.f32.vlgmr.msra.gmra.mxu0 %vm1254_vm8, %v1220_v50  ;;  %v1213_v43 = vsel %vm1201_vm6, %v624_v24, %v1112_v62 }
 0x1e4   : > { %1999 = vmatprep.mubr.msk.f32.mxu0 %vm1254_vm8, %v1221_v53  ;;  %v466_v26 = vadd.f32 %v450_v1, %v342_v12  ;;  %v610_v50 = vadd.f32 %v2896_v56, %v588_v36 }
 0x1e5   : > { %v1160_v49 = vpop.permute.xlu0 %1159 }
 0x1e6   : > { %v1222_v61 = vsel %vm1218_vm7, %v1205_v46, %v1160_v49  ;;  %v590_v44 = vadd.f32 %v574_v14, %v466_v26  ;;  %v626_v37 = vmax.f32 %v610_v50, 0.0 }
 0x1e7   : > { %2000 = vmatmul.mubr.msk.f32.gmra.mxu0 %vm1254_vm8, %v1222_v61 }
 0x1e8   : > { %2002 = vmatprep.mubr.msk.f32.mxu0 %vm1254_vm8, %v1223_v9  ;;  %v612_v6 = vadd.f32 %v2896_v56, %v590_v44  ;;  %v1215_v41 = vsel %vm1201_vm6, %v626_v37, %v1116_v48 }
 0x1e9   : > { %v1164_v3 = vpop.permute.xlu0 %1163 }
 0x1ea   : > { %v1224_v45 = vsel %vm1218_vm7, %v1207_v10, %v1164_v3  ;;  %v628_v28 = vmax.f32 %v612_v6, 0.0 }
 0x1eb   : > { %2003 = vmatmul.mubr.msk.f32.gmra.mxu0 %vm1254_vm8, %v1224_v45  ;;  %v1120_v40 = vpop.permute.xlu1 %1119 }
 0x1ec   : > { %2005 = vmatprep.mubr.msk.f32.mxu0 %vm1254_vm8, %v1225_v4  ;;  %v1217_v63 = vsel %vm1201_vm6, %v628_v28, %v1120_v40 }
 0x1ed   : > { %v1168_v32 = vpop.permute.xlu0 %1167 }
 0x1ee   : > { %v1226_v22 = vsel %vm1218_vm7, %v1209_v15, %v1168_v32 }
 0x1ef   : > { %2006 = vmatmul.mubr.msk.f32.gmra.mxu0 %vm1254_vm8, %v1226_v22  ;;  %v1176_v23 = vpop.permute.xlu1 %1175 }
 0x1f0   : > { %v1230_v53 = vsel %vm1218_vm7, %v1213_v43, %v1176_v23 }
 0x1f1   : > { %v1172_v39 = vpop.permute.xlu0 %1171 }
 0x1f2   : > { %v1228_v35 = vsel %vm1218_vm7, %v1211_v20, %v1172_v39 }
 0x1f3   : > { %2009 = vmatmul.mubr.msk.f32.vlgmr.msra.gmra.mxu1 %vm1254_vm8, %v1228_v35  ;;  %v1180_v29 = vpop.permute.xlu1 %1179 }
 0x1f4   : > { %2011 = vmatprep.mubr.msk.f32.mxu1 %vm1254_vm8, %v1229_v58  ;;  %v1232_v46 = vsel %vm1218_vm7, %v1215_v41, %v1180_v29 }
 0x1f5   : > { %v1178_v55 = vpop.permute.xlu0 %1177 }
 0x1f6   : > { %v1231_v34 = vsel %vm1218_vm7, %v1214_v30, %v1178_v55  ;;  %v3296_v55 = vld [vmem:[#allocation6_spill] sm:$0xff] }
 0x1f7   : > { %2012 = vmatmul.mubr.msk.f32.gmra.mxu1 %vm1254_vm8, %v1230_v53  ;;  %v1184_v52 = vpop.permute.xlu1 %1183  ;;  %v1676_v53 = vrot.slane %v2763_v59, %v3296_v55 }
 0x1f8   : > { %2014 = vmatprep.mubr.msk.f32.mxu1 %vm1254_vm8, %v1231_v34  ;;  %v1234_v56 = vsel %vm1218_vm7, %v1217_v63, %v1184_v52  ;;  %v3297_v63 = vlaneseq }
 0x1f9   : > { %v1118_v62 = vpop.permute.xlu0 %1117 }
 0x1fa   : > { %v1216_v51 = vsel %vm1201_vm6, %v2724_v19, %v1118_v62 }
 0x1fb   : > { %2015 = vmatmul.mubr.msk.f32.gmra.mxu1 %vm1254_vm8, %v1232_v46  ;;  %v1602_v6 = vpop.permute.xlu1 %1601 }
 0x1fd   : > { %v1182_v49 = vpop.permute.xlu0 %1181 }
 0x1fe   : > { %v1233_v8 = vsel %vm1218_vm7, %v1216_v51, %v1182_v49 }
 0x1ff   : > { %2017 = vmatprep.mubr.msk.f32.mxu1 %vm1254_vm8, %v1233_v8  ;;  %v3071_v41 = vpop.permute.xlu1 %1612  ;;  %v3088_v8 = vand.u32 127, %v3297_v63 }
 0x200   : > { %2018 = vmatmul.mubr.msk.f32.gmra.mxu1 %vm1254_vm8, %v1234_v56 }
 0x201   : > { %vm1684_vm12 = vcmp.eq.s32.totalorder %v3088_v8, %v1602_v6  ;;  %vm1686_vm14 = vcmp.eq.s32.totalorder %v3088_v8, %v3071_v41 }
 0x203   : > { %v3073_v62 = vpop.permute.xlu1 %1616 }
 0x204   : > { %vm1687_vm15 = vcmp.eq.s32.totalorder %v3088_v8, %v3073_v62 }
 0x207   : > { %v3075_v46 = vpop.permute.xlu1 %1627 }
 0x208   : > { %vm1689_vm2 = vcmp.eq.s32.totalorder %v3088_v8, %v3075_v46 }
 0x20b   : > { %v3077_v28 = vpop.permute.xlu1 %1638 }
 0x20c   : > { %vm1691_vm4 = vcmp.eq.s32.totalorder %v3088_v8, %v3077_v28 }
 0x20f   : > { %v3081_v52 = vpop.permute.xlu1 %1649 }
 0x210   : > { %vm1693_vm5 = vcmp.eq.s32.totalorder %v3088_v8, %v3081_v52 }
 0x213   : > { %v3085_v49 = vpop.permute.xlu1 %1660 }
 0x214   : > { %vm1695_vm6 = vcmp.eq.s32.totalorder %v3088_v8, %v3085_v49 }
 0x2a3   : > { %v1998_v61 = vpop.f32.mrf.mxu0 }
 0x2a4   : > { %v2989_v19 = vadd.f32 %v1998_v61, %v2986_v42 }
 0x2a5   : > { %v1369_v0 = vpop.f32.mrf.mxu0 }
 0x2a6   : > { %v1453_v2 = vsel %vm1449_vm9, %v2989_v19, -inf  ;;  %v2997_v10 = vadd.f32 %v2986_v42, %v1369_v0 }
 0x2a7   : > { %1454 = vmax.xlane.f32.xlu1 %v1453_v2  ;;  %v2001_v54 = vpop.f32.mrf.mxu0 }
 0x2a8   : > { %v3007_v57 = vadd.f32 %v2001_v54, %v2986_v42  ;;  %v1450_v13 = vsel %vm1449_vm9, %v2997_v10, -inf }
 0x2a9   : > { %v1379_v9 = vpop.f32.mrf.mxu0 }
 0x2aa   : > { %v1459_v22 = vsel %vm1449_vm9, %v3007_v57, -inf  ;;  %v3030_v26 = vadd.f32 %v2986_v42, %v1379_v9 }
 0x2ab   : > { %v2004_v31 = vpop.f32.mrf.mxu0 }
 0x2ac   : > { %v3040_v14 = vadd.f32 %v2004_v31, %v2986_v42  ;;  %v1456_v17 = vsel %vm1449_vm9, %v3030_v26, -inf }
 0x2ad   : > { %v1389_v45 = vpop.f32.mrf.mxu0 }
 0x2ae   : > { %v3015_v1 = vadd.f32 %v2986_v42, %v1389_v45  ;;  %v1465_v50 = vsel %vm1449_vm9, %v3040_v14, -inf }
 0x2af   : > { %v2007_v18 = vpop.f32.mrf.mxu0 }
 0x2b0   : > { %v1462_v36 = vsel %vm1449_vm9, %v3015_v1, -inf  ;;  %v3052_v24 = vadd.f32 %v2007_v18, %v2986_v42 }
 0x2b1   : > { %v1399_v47 = vpop.f32.mrf.mxu0 }
 0x2b2   : > { %v3035_v20 = vadd.f32 %v2986_v42, %v1399_v47  ;;  %v1471_v21 = vsel %vm1449_vm9, %v3052_v24, -inf }
 0x2b3   : > { %v2010_v48 = vpop.f32.mrf.mxu1 }
 0x2b4   : > { %v2994_v11 = vadd.f32 %v2010_v48, %v2986_v42  ;;  %v1468_v27 = vsel %vm1449_vm9, %v3035_v20, -inf }
 0x2b5   : > { %v1409_v38 = vpop.f32.mrf.mxu1 }
 0x2b6   : > { %v3000_v33 = vadd.f32 %v2986_v42, %v1409_v38  ;;  %v1477_v3 = vsel %vm1449_vm9, %v2994_v11, -inf }
 0x2b7   : > { %1478 = vmax.xlane.f32.xlu0 %v1477_v3  ;;  %v2013_v60 = vpop.f32.mrf.mxu1 }
 0x2b8   : > { %v1474_v25 = vsel %vm1449_vm9, %v3000_v33, -inf  ;;  %v3020_v32 = vadd.f32 %v2013_v60, %v2986_v42 }
 0x2b9   : > { %1475 = vmax.xlane.f32.xlu1 %v1474_v25  ;;  %v1419_v5 = vpop.f32.mrf.mxu1 }
 0x2ba   : > { %v3010_v4 = vadd.f32 %v2986_v42, %v1419_v5  ;;  %v1483_v23 = vsel %vm1449_vm9, %v3020_v32, -inf }
 0x2bb   : > { %1451 = vmax.xlane.f32.xlu0 %v1450_v13  ;;  %v2016_v40 = vpop.f32.mrf.mxu1 }
 0x2bc   : > { %v1480_v12 = vsel %vm1449_vm9, %v3010_v4, -inf  ;;  %v3047_v35 = vadd.f32 %v2016_v40, %v2986_v42 }
 0x2bd   : > { %1481 = vmax.xlane.f32.xlu1 %v1480_v12  ;;  %v1429_v15 = vpop.f32.mrf.mxu1 }
 0x2be   : > { %v3025_v16 = vadd.f32 %v2986_v42, %v1429_v15  ;;  %v1489_v58 = vsel %vm1449_vm9, %v3047_v35, -inf }
 0x2bf   : > { %1460 = vmax.xlane.f32.xlu0 %v1459_v22 }
 0x2c0   : > { %v1486_v39 = vsel %vm1449_vm9, %v3025_v16, -inf  ;;  %v2019_v44 = vpop.f32.mrf.mxu1 }
 0x2c1   : > { %1463 = vmax.xlane.f32.xlu1 %v1462_v36  ;;  %v3057_v43 = vadd.f32 %v2019_v44, %v2986_v42 }
 0x2c2   : > { %v1439_v29 = vpop.f32.mrf.mxu1 }
 0x2c3   : > { %1484 = vmax.xlane.f32.xlu0 %v1483_v23  ;;  %v1495_v30 = vsel %vm1449_vm9, %v3057_v43, -inf  ;;  %v3067_v34 = vadd.f32 %v2986_v42, %v1439_v29 }
 0x2c5   : > { %1487 = vmax.xlane.f32.xlu1 %v1486_v39  ;;  %v1492_v37 = vsel %vm1449_vm9, %v3067_v34, -inf }
 0x2c7   : > { %1457 = vmax.xlane.f32.xlu0 %v1456_v17 }
 0x2c9   : > { %1469 = vmax.xlane.f32.xlu1 %v1468_v27 }
 0x2cb   : > { %1466 = vmax.xlane.f32.xlu0 %v1465_v50 }
 0x2cf   : > { %1490 = vmax.xlane.f32.xlu0 %v1489_v58 }
 0x2d3   : > { %1472 = vmax.xlane.f32.xlu0 %v1471_v21 }
 0x2d7   : > { %1496 = vmax.xlane.f32.xlu0 %v1495_v30 }
 0x2da   : > { %1671 = vbcast.lane.b32.xlu1 %v2795_v7, 264  ;;  %v1606_v7 = vpop.permute.xlu0 %1605 }
 0x2db   : > { %vm1685_vm10 = vcmp.eq.s32.totalorder %v3088_v8, %v1606_v7 }
 0x2de   : > { %v3079_v59 = vpop.permute.xlu0 %1623 }
 0x2df   : > { %vm1688_vm1 = vcmp.eq.s32.totalorder %v3088_v8, %v3079_v59 }
 0x2e2   : > { %v3083_v51 = vpop.permute.xlu0 %1634 }
 0x2e3   : > { %vm1690_vm3 = vcmp.eq.s32.totalorder %v3088_v8, %v3083_v51 }
 0x2e6   : > { %v1646_v56 = vpop.permute.xlu0 %1645 }
 0x2e7   : > { %vm1692_vm11 = vcmp.eq.s32.totalorder %v3088_v8, %v1646_v56 }
 0x2ea   : > { %v1657_v54 = vpop.permute.xlu0 %1656 }
 0x2eb   : > { %vm1694_vm13 = vcmp.eq.s32.totalorder %v3088_v8, %v1657_v54 }
 0x2ed   : > { %1678 = vbcast.lane.b32.xlu0 %v1676_v53, 256 }
 0x2ee   : > { %v3093_v48 = vpop.permute.xlu0 %1667 }
 0x2fe   : > { %1493 = vmax.xlane.f32.xlu1 %v1492_v37 }
 0x30f   : > { %1682 = vbcast.lane.b32.xlu1 %v1676_v53, 264 }
 0x330   : > { %v1455_v42 = vpop.xlane.xlu1 %1454 }
 0x331   : > { %v1499_v61 = vsub.f32 %v2989_v19, %v1455_v42 }
 0x333   : > { %v1701_v2 = vsel %vm1685_vm10, %v1499_v61, 0.0  ;;  %v1516_v9 = vmul.f32 1.442695, %v1499_v61  ;;  %vm1696_vm10 = vcmp.eq.s32.totalorder %v3088_v8, %v3093_v48 }
 0x334   : > { %v1719_v0 = vsel %vm1449_vm9, %v1701_v2, 0.0 }
 0x335   : > { %1720 = vadd.xlane.f32.xlu0 %v1719_v0  ;;  %2076 = vpow2.f32 %v1516_v9 }
 0x340   : > { %v1479_v31 = vpop.xlane.xlu0 %1478 }
 0x341   : > { %v3096_v38 = vsub.f32 %v2994_v11, %v1479_v31 }
 0x342   : > { %v1476_v3 = vpop.xlane.xlu1 %1475  ;;  %v2077_v22 = vpop.eup %2076 }
 0x343   : > { %v1506_v60 = vsub.f32 %v3000_v33, %v1476_v3  ;;  %v1532_v19 = vmul.f32 1.442695, %v3096_v38  ;;  %v1709_v51 = vsel %vm1693_vm5, %v3096_v38, 0.0 }
 0x344   : > { %v1452_v25 = vpop.xlane.xlu0 %1451 }
 0x345   : > { %v1530_v45 = vmul.f32 1.442695, %v1506_v60  ;;  %v3101_v5 = vsel %vm1692_vm11, %v1506_v60, 0.0  ;;  %v1498_v13 = vsub.f32 %v2997_v10, %v1452_v25 }
 0x346   : > { %v1482_v40 = vpop.xlane.xlu1 %1481 }
 0x347   : > { %2078 = vpow2.f32 %v1530_v45  ;;  %v1700_v12 = vsel %vm1684_vm12, %v1498_v13, 0.0  ;;  %v1508_v11 = vsub.f32 %v3010_v4, %v1482_v40  ;;  %v1514_v33 = vmul.f32 1.442695, %v1498_v13 }
 0x348   : > { %2080 = vpow2.f32 %v1532_v19  ;;  %v1461_v18 = vpop.xlane.xlu0 %1460  ;;  %v1716_v15 = vsel %vm1449_vm9, %v1700_v12, 0.0  ;;  %v1549_v4 = vsel %vm1449_vm9, %v2077_v22, 0.0 }
 0x349   : > { %v3108_v36 = vsel %vm1694_vm13, %v1508_v11, 0.0  ;;  %v3111_v47 = vsub.f32 %v3007_v57, %v1461_v18  ;;  %1717 = vadd.xlane.f32.xlu1 %v1716_v15  ;;  %2082 = vpow2.f32 %v1514_v33  ;;  %v1534_v27 = vmul.f32 1.442695, %v1508_v11 }
 0x34a   : > { %v1464_v10 = vpop.xlane.xlu1 %1463 }
 0x34b   : > { %v1520_v23 = vmul.f32 1.442695, %v3111_v47  ;;  %v3119_v58 = vsub.f32 %v3015_v1, %v1464_v10  ;;  %v1703_v15 = vsel %vm1687_vm15, %v3111_v47, 0.0 }
 0x34c   : > { %v1485_v39 = vpop.xlane.xlu0 %1484  ;;  %v1725_v10 = vsel %vm1449_vm9, %v1703_v15, 0.0 }
 0x34d   : > { %v3116_v17 = vsub.f32 %v3020_v32, %v1485_v39  ;;  %1550 = vadd.xlane.f32.xlu1 %v1549_v4  ;;  %2084 = vpow2.f32 %v1520_v23  ;;  %v1522_v32 = vmul.f32 1.442695, %v3119_v58 }
 0x34e   : > { %v1488_v50 = vpop.xlane.xlu1 %1487 }
 0x34f   : > { %v1536_v57 = vmul.f32 1.442695, %v3116_v17  ;;  %v3135_v63 = vsub.f32 %v3025_v16, %v1488_v50  ;;  %v1711_v28 = vsel %vm1695_vm6, %v3116_v17, 0.0 }
 0x350   : > { %v1458_v44 = vpop.xlane.xlu0 %1457  ;;  %v1749_v52 = vsel %vm1449_vm9, %v1711_v28, 0.0 }
 0x351   : > { %2086 = vpow2.f32 %v1536_v57  ;;  %v1500_v21 = vsub.f32 %v3030_v26, %v1458_v44  ;;  %v1704_v44 = vsel %vm1688_vm1, %v3119_v58, 0.0 }
 0x352   : > { %2088 = vpow2.f32 %v1534_v27  ;;  %v1470_v30 = vpop.xlane.xlu1 %1469 }
 0x353   : > { %v1518_v55 = vmul.f32 1.442695, %v1500_v21  ;;  %v1702_v53 = vsel %vm1686_vm14, %v1500_v21, 0.0  ;;  %v3127_v29 = vsub.f32 %v3035_v20, %v1470_v30 }
 0x354   : > { %v2079_v1 = vpop.eup %2078  ;;  %v1467_v37 = vpop.xlane.xlu0 %1466  ;;  %v1722_v6 = vsel %vm1449_vm9, %v1702_v53, 0.0 }
 0x355   : > { %v2081_v7 = vpop.eup %2080  ;;  %2090 = vpow2.f32 %v1518_v55  ;;  %v3131_v26 = vsub.f32 %v3040_v14, %v1467_v37  ;;  %1723 = vadd.xlane.f32.xlu0 %v1722_v6  ;;  %v1570_v41 = vsel %vm1449_vm9, %v2079_v1, 0.0  ;;  %v1526_v56 = vmul.f32 1.442695, %v3127_v29 }
 0x356   : > { %2092 = vpow2.f32 %v1522_v32  ;;  %1571 = vadd.xlane.f32.xlu1 %v1570_v41  ;;  %v1573_v61 = vsel %vm1449_vm9, %v2081_v7, 0.0  ;;  %v2083_v2 = vpop.eup %2082  ;;  %v1538_v14 = vmul.f32 1.442695, %v3135_v63  ;;  %v1728_v32 = vsel %vm1449_vm9, %v1704_v44, 0.0  ;;  %v1672_v6 = vpop.permute.xlu1 %1671 }
 0x357   : > { %v1524_v20 = vmul.f32 1.442695, %v3131_v26  ;;  %2094 = vpow2.f32 %v1526_v56  ;;  %v1546_v16 = vsel %vm1449_vm9, %v2083_v2, 0.0  ;;  %v1705_v55 = vsel %vm1689_vm2, %v3131_v26, 0.0 }
 0x358   : > { %v1491_v42 = vpop.xlane.xlu0 %1490  ;;  %v1731_v59 = vsel %vm1449_vm9, %v1705_v55, 0.0  ;;  %v1706_v58 = vsel %vm1690_vm3, %v3127_v29, 0.0  ;;  %v1743_v29 = vsel %vm1449_vm9, %v1709_v51, 0.0  ;;  %vm1697_vm7 = vcmp.eq.s32.totalorder %v3088_v8, %v1672_v6 }
 0x359   : > { %1574 = vadd.xlane.f32.xlu0 %v1573_v61  ;;  %v3142_v0 = vsub.f32 %v3047_v35, %v1491_v42  ;;  %2096 = vpow2.f32 %v1524_v20  ;;  %v1734_v46 = vsel %vm1449_vm9, %v1706_v58, 0.0  ;;  %v1740_v61 = vsel %vm1449_vm9, %v3101_v5, 0.0 }
 0x35a   : > { %v2085_v9 = vpop.eup %2084  ;;  %2098 = vpow2.f32 %v1538_v14  ;;  %v1746_v14 = vsel %vm1449_vm9, %v3108_v36, 0.0 }
 0x35b   : > { %v1540_v19 = vmul.f32 1.442695, %v3142_v0  ;;  %v1555_v35 = vsel %vm1449_vm9, %v2085_v9, 0.0  ;;  %v1713_v41 = vsel %vm1697_vm7, %v3142_v0, 0.0  ;;  %v1712_v0 = vsel %vm1696_vm10, %v3135_v63, 0.0 }
 0x35c   : > { %v1473_v54 = vpop.xlane.xlu0 %1472  ;;  %v1755_v49 = vsel %vm1449_vm9, %v1713_v41, 0.0 }
 0x35d   : > { %v1505_v31 = vsub.f32 %v3052_v24, %v1473_v54  ;;  %1547 = vadd.xlane.f32.xlu0 %v1546_v16  ;;  %v1752_v54 = vsel %vm1449_vm9, %v1712_v0, 0.0 }
 0x35e   : > { %v2087_v3 = vpop.eup %2086 }
 0x35f   : > { %v2089_v60 = vpop.eup %2088  ;;  %v1528_v25 = vmul.f32 1.442695, %v1505_v31  ;;  %v1579_v45 = vsel %vm1449_vm9, %v2087_v3, 0.0  ;;  %v1707_v1 = vsel %vm1691_vm4, %v1505_v31, 0.0 }
 0x360   : > { %v1497_v13 = vpop.xlane.xlu0 %1496  ;;  %1580 = vadd.xlane.f32.xlu1 %v1579_v45  ;;  %v1576_v11 = vsel %vm1449_vm9, %v2089_v60, 0.0  ;;  %v1737_v37 = vsel %vm1449_vm9, %v1707_v1, 0.0 }
 0x361   : > { %2100 = vpow2.f32 %v1528_v25  ;;  %v3150_v40 = vsub.f32 %v3057_v43, %v1497_v13  ;;  %1556 = vadd.xlane.f32.xlu0 %v1555_v35 }
 0x362   : > { %v2091_v12 = vpop.eup %2090  ;;  %2102 = vpow2.f32 %v1540_v19 }
 0x363   : > { %v1544_v24 = vmul.f32 1.442695, %v3150_v40  ;;  %v1552_v33 = vsel %vm1449_vm9, %v2091_v12, 0.0  ;;  %v2093_v18 = vpop.eup %2092 }
 0x364   : > { %1577 = vadd.xlane.f32.xlu1 %v1576_v11  ;;  %v1558_v43 = vsel %vm1449_vm9, %v2093_v18, 0.0  ;;  %v2095_v22 = vpop.eup %2094  ;;  %v1679_v2 = vpop.permute.xlu0 %1678 }
 0x365   : > { %1553 = vadd.xlane.f32.xlu0 %v1552_v33  ;;  %2104 = vpow2.f32 %v1544_v24  ;;  %v1564_v39 = vsel %vm1449_vm9, %v2095_v22, 0.0  ;;  %vm1698_vm11 = vcmp.eq.s32.totalorder %v3088_v8, %v1679_v2 }
 0x366   : > { %v2097_v23 = vpop.eup %2096 }
 0x367   : > { %v2099_v4 = vpop.eup %2098  ;;  %v1561_v27 = vsel %vm1449_vm9, %v2097_v23, 0.0 }
 0x368   : > { %1559 = vadd.xlane.f32.xlu1 %v1558_v43  ;;  %v1582_v47 = vsel %vm1449_vm9, %v2099_v4, 0.0 }
 0x369   : > { %1726 = vadd.xlane.f32.xlu0 %v1725_v10 }
 0x36c   : > { %1565 = vadd.xlane.f32.xlu1 %v1564_v39 }
 0x36d   : > { %1562 = vadd.xlane.f32.xlu0 %v1561_v27 }
 0x36e   : > { %v2101_v62 = vpop.eup %2100 }
 0x36f   : > { %v1567_v50 = vsel %vm1449_vm9, %v2101_v62, 0.0  ;;  %v2103_v57 = vpop.eup %2102 }
 0x370   : > { %1583 = vadd.xlane.f32.xlu1 %v1582_v47  ;;  %v1585_v21 = vsel %vm1449_vm9, %v2103_v57, 0.0 }
 0x371   : > { %1568 = vadd.xlane.f32.xlu0 %v1567_v50 }
 0x372   : > { %v2105_v30 = vpop.eup %2104 }
 0x373   : > { %v1591_v53 = vsel %vm1449_vm9, %v2105_v30, 0.0 }
 0x374   : > { %1586 = vadd.xlane.f32.xlu1 %v1585_v21 }
 0x375   : > { %1729 = vadd.xlane.f32.xlu0 %v1728_v32 }
 0x378   : > { %1592 = vadd.xlane.f32.xlu1 %v1591_v53 }
 0x379   : > { %1732 = vadd.xlane.f32.xlu0 %v1731_v59 }
 0x37d   : > { %1735 = vadd.xlane.f32.xlu0 %v1734_v46 }
 0x381   : > { %1738 = vadd.xlane.f32.xlu0 %v1737_v37 }
 0x385   : > { %1744 = vadd.xlane.f32.xlu0 %v1743_v29 }
 0x387   : > { %v1494_v7 = vpop.xlane.xlu1 %1493 }
 0x388   : > { %v1512_v26 = vsub.f32 %v3067_v34, %v1494_v7 }
 0x389   : > { %1750 = vadd.xlane.f32.xlu0 %v1749_v52 }
 0x38a   : > { %v1542_v38 = vmul.f32 1.442695, %v1512_v26  ;;  %v1714_v16 = vsel %vm1698_vm11, %v1512_v26, 0.0 }
 0x38b   : > { %v1683_v56 = vpop.permute.xlu1 %1682  ;;  %v1758_v9 = vsel %vm1449_vm9, %v1714_v16, 0.0 }
 0x38c   : > { %2106 = vpow2.f32 %v1542_v38  ;;  %vm1699_vm8 = vcmp.eq.s32.totalorder %v3088_v8, %v1683_v56 }
 0x38d   : > { %v1715_v17 = vsel %vm1699_vm8, %v3150_v40, 0.0  ;;  %1756 = vadd.xlane.f32.xlu0 %v1755_v49 }
 0x38e   : > { %v1761_v20 = vsel %vm1449_vm9, %v1715_v17, 0.0 }
 0x391   : > { %1762 = vadd.xlane.f32.xlu0 %v1761_v20 }
 0x399   : > { %v2107_v42 = vpop.eup %2106 }
 0x39a   : > { %v1588_v34 = vsel %vm1449_vm9, %v2107_v42, 0.0 }
 0x39b   : > { %1589 = vadd.xlane.f32.xlu1 %v1588_v34 }
 0x39f   : > { %1741 = vadd.xlane.f32.xlu1 %v1740_v61 }
 0x3a3   : > { %1747 = vadd.xlane.f32.xlu1 %v1746_v14 }
 0x3a7   : > { %1753 = vadd.xlane.f32.xlu1 %v1752_v54 }
 0x3ab   : > { %1759 = vadd.xlane.f32.xlu1 %v1758_v9 }
 0x3be   : > { %v1721_v5 = vpop.xlane.xlu0 %1720 }
 0x3d2   : > { %v1718_v48 = vpop.xlane.xlu1 %1717 }
 0x3d6   : > { %v1551_v25 = vpop.xlane.xlu1 %1550 }
 0x3de   : > { %v1724_v31 = vpop.xlane.xlu0 %1723 }
 0x3df   : > { %v1572_v45 = vpop.xlane.xlu1 %1571 }
 0x3e2   : > { %v1575_v3 = vpop.xlane.xlu0 %1574 }
 0x3e6   : > { %v1548_v60 = vpop.xlane.xlu0 %1547 }
 0x3e7   : > { %2108 = vlog2.f32 %v1548_v60 }
 0x3e8   : > { %2110 = vlog2.f32 %v1551_v25 }
 0x3e9   : > { %v1581_v63 = vpop.xlane.xlu1 %1580 }
 0x3ea   : > { %v1557_v19 = vpop.xlane.xlu0 %1556 }
 0x3ed   : > { %v1578_v8 = vpop.xlane.xlu1 %1577 }
 0x3ee   : > { %v1554_v36 = vpop.xlane.xlu0 %1553 }
 0x3ef   : > { %2112 = vlog2.f32 %v1554_v36 }
 0x3f0   : > { %2114 = vlog2.f32 %v1557_v19 }
 0x3f1   : > { %v1560_v40 = vpop.xlane.xlu1 %1559 }
 0x3f2   : > { %v1727_v13 = vpop.xlane.xlu0 %1726  ;;  %2116 = vlog2.f32 %v1560_v40 }
 0x3f4   : > { %v2109_v24 = vpop.eup %2108 }
 0x3f5   : > { %v2111_v33 = vpop.eup %2110  ;;  %v1566_v15 = vpop.xlane.xlu1 %1565  ;;  %v1765_v43 = vmul.f32 0.6931472, %v2109_v24 }
 0x3f6   : > { %v1563_v35 = vpop.xlane.xlu0 %1562  ;;  %v1767_v22 = vmul.f32 0.6931472, %v2111_v33 }
 0x3f7   : > { %2118 = vlog2.f32 %v1563_v35  ;;  %v1796_v39 = vsub.f32 %v1765_v43, %v1718_v48 }
 0x3f8   : > { %2120 = vlog2.f32 %v1566_v15  ;;  %v1797_v27 = vsub.f32 %v1767_v22, %v1721_v5 }
 0x3f9   : > { %v1812_v50 = vsel %vm220_vm0, %v1796_v39, 0.0  ;;  %v1584_v21 = vpop.xlane.xlu1 %1583 }
 0x3fa   : > { %v1569_v12 = vpop.xlane.xlu0 %1568  ;;  %v1813_v32 = vsel %vm220_vm0, %v1797_v27, 0.0 }
 0x3fb   : > { %2122 = vlog2.f32 %v1569_v12  ;;  %v1814_v59 = vadd.f32 %v1813_v32, %v1812_v50 }
 0x3fc   : > { %v2113_v18 = vpop.eup %2112  ;;  %2124 = vlog2.f32 %v1572_v45 }
 0x3fd   : > { %v1769_v10 = vmul.f32 0.6931472, %v2113_v18  ;;  %v2115_v4 = vpop.eup %2114  ;;  %2126 = vlog2.f32 %v1575_v3  ;;  %v1587_v6 = vpop.xlane.xlu1 %1586 }
 0x3fe   : > { %v1730_v11 = vpop.xlane.xlu0 %1729  ;;  %v1771_v57 = vmul.f32 0.6931472, %v2115_v4  ;;  %2128 = vlog2.f32 %v1581_v63 }
 0x3ff   : > { %v1798_v62 = vsub.f32 %v1769_v10, %v1724_v31  ;;  %v2117_v47 = vpop.eup %2116  ;;  %2130 = vlog2.f32 %v1578_v8 }
 0x400   : > { %v1773_v53 = vmul.f32 0.6931472, %v2117_v47  ;;  %v1799_v58 = vsub.f32 %v1771_v57, %v1727_v13  ;;  %2132 = vlog2.f32 %v1584_v21 }
 0x401   : > { %v1815_v55 = vsel %vm220_vm0, %v1798_v62, 0.0  ;;  %2134 = vlog2.f32 %v1587_v6  ;;  %v1593_v20 = vpop.xlane.xlu1 %1592 }
 0x402   : > { %v1733_v23 = vpop.xlane.xlu0 %1732  ;;  %v1816_v1 = vadd.f32 %v1815_v55, %v1814_v59  ;;  %v1800_v37 = vsub.f32 %v1773_v53, %v1730_v11  ;;  %v1817_v28 = vsel %vm220_vm0, %v1799_v58, 0.0  ;;  %2136 = vlog2.f32 %v1593_v20 }
 0x404   : > { %v2119_v44 = vpop.eup %2118  ;;  %v1818_v52 = vadd.f32 %v1817_v28, %v1816_v1  ;;  %v1819_v41 = vsel %vm220_vm0, %v1800_v37, 0.0 }
 0x405   : > { %v1775_v46 = vmul.f32 0.6931472, %v2119_v44  ;;  %v2121_v51 = vpop.eup %2120 }
 0x406   : > { %v1736_v30 = vpop.xlane.xlu0 %1735  ;;  %v1777_v38 = vmul.f32 0.6931472, %v2121_v51  ;;  %v1820_v17 = vadd.f32 %v1819_v41, %v1818_v52 }
 0x407   : > { %v1801_v7 = vsub.f32 %v1775_v46, %v1733_v23 }
 0x408   : > { %v2123_v26 = vpop.eup %2122  ;;  %v1802_v34 = vsub.f32 %v1777_v38, %v1736_v30 }
 0x409   : > { %v1821_v56 = vsel %vm220_vm0, %v1801_v7, 0.0  ;;  %v1779_v49 = vmul.f32 0.6931472, %v2123_v26  ;;  %v2125_v2 = vpop.eup %2124 }
 0x40a   : > { %v1739_v29 = vpop.xlane.xlu0 %1738  ;;  %v1822_v61 = vadd.f32 %v1821_v56, %v1820_v17  ;;  %v2127_v0 = vpop.eup %2126  ;;  %v1823_v16 = vsel %vm220_vm0, %v1802_v34, 0.0  ;;  %v1781_v48 = vmul.f32 0.6931472, %v2125_v2 }
 0x40b   : > { %v1803_v14 = vsub.f32 %v1779_v49, %v1739_v29  ;;  %v2129_v31 = vpop.eup %2128  ;;  %v1783_v60 = vmul.f32 0.6931472, %v2127_v0 }
 0x40c   : > { %v1824_v9 = vadd.f32 %v1823_v16, %v1822_v61  ;;  %v2131_v19 = vpop.eup %2130  ;;  %v1787_v8 = vmul.f32 0.6931472, %v2129_v31 }
 0x40d   : > { %v1825_v3 = vsel %vm220_vm0, %v1803_v14, 0.0  ;;  %v2133_v13 = vpop.eup %2132  ;;  %v1785_v40 = vmul.f32 0.6931472, %v2131_v19 }
 0x40e   : > { %v1745_v42 = vpop.xlane.xlu0 %1744  ;;  %v1826_v63 = vadd.f32 %v1825_v3, %v1824_v9  ;;  %v2135_v12 = vpop.eup %2134  ;;  %v1789_v39 = vmul.f32 0.6931472, %v2133_v13 }
 0x40f   : > { %v1805_v36 = vsub.f32 %v1783_v60, %v1745_v42  ;;  %v1791_v10 = vmul.f32 0.6931472, %v2135_v12  ;;  %v2137_v4 = vpop.eup %2136 }
 0x410   : > { %v1795_v32 = vmul.f32 0.6931472, %v2137_v4 }
 0x411   : > { %v1829_v18 = vsel %vm220_vm0, %v1805_v36, 0.0 }
 0x412   : > { %v1751_v5 = vpop.xlane.xlu0 %1750 }
 0x413   : > { %v1807_v15 = vsub.f32 %v1787_v8, %v1751_v5 }
 0x415   : > { %v1833_v47 = vsel %vm220_vm0, %v1807_v15, 0.0 }
 0x416   : > { %v1757_v24 = vpop.xlane.xlu0 %1756 }
 0x417   : > { %v1809_v50 = vsub.f32 %v1791_v10, %v1757_v24 }
 0x419   : > { %v1837_v46 = vsel %vm220_vm0, %v1809_v50, 0.0 }
 0x41a   : > { %v1763_v21 = vpop.xlane.xlu0 %1762 }
 0x41b   : > { %v1811_v1 = vsub.f32 %v1795_v32, %v1763_v21 }
 0x41d   : > { %v1841_v28 = vsel %vm220_vm0, %v1811_v1, 0.0 }
 0x424   : > { %v1590_v54 = vpop.xlane.xlu1 %1589 }
 0x425   : > { %2138 = vlog2.f32 %v1590_v54 }
 0x428   : > { %v1742_v25 = vpop.xlane.xlu1 %1741 }
 0x429   : > { %v1804_v45 = vsub.f32 %v1781_v48, %v1742_v25 }
 0x42b   : > { %v1827_v35 = vsel %vm220_vm0, %v1804_v45, 0.0 }
 0x42c   : > { %v1828_v11 = vadd.f32 %v1827_v35, %v1826_v63  ;;  %v1748_v33 = vpop.xlane.xlu1 %1747 }
 0x42d   : > { %v1806_v43 = vsub.f32 %v1785_v40, %v1748_v33 }
 0x42e   : > { %v1830_v22 = vadd.f32 %v1829_v18, %v1828_v11 }
 0x42f   : > { %v1831_v23 = vsel %vm220_vm0, %v1806_v43, 0.0 }
 0x430   : > { %v1832_v27 = vadd.f32 %v1831_v23, %v1830_v22  ;;  %v1754_v62 = vpop.xlane.xlu1 %1753 }
 0x431   : > { %v1808_v57 = vsub.f32 %v1789_v39, %v1754_v62 }
 0x432   : > { %v2139_v44 = vpop.eup %2138  ;;  %v1834_v30 = vadd.f32 %v1833_v47, %v1832_v27 }
 0x433   : > { %v1835_v55 = vsel %vm220_vm0, %v1808_v57, 0.0  ;;  %v1793_v53 = vmul.f32 0.6931472, %v2139_v44 }
 0x434   : > { %v1836_v59 = vadd.f32 %v1835_v55, %v1834_v30  ;;  %v1760_v58 = vpop.xlane.xlu1 %1759 }
 0x435   : > { %v1810_v37 = vsub.f32 %v1793_v53, %v1760_v58 }
 0x436   : > { %v1838_v51 = vadd.f32 %v1837_v46, %v1836_v59 }
 0x437   : > { %v1839_v6 = vsel %vm220_vm0, %v1810_v37, 0.0 }
 0x438   : > { %v1840_v29 = vadd.f32 %v1839_v6, %v1838_v51 }
 0x43a   : > { %v1842_v7 = vadd.f32 %v1841_v28, %v1840_v29 }
 0x43c   : > { %1843 = vadd.xlane.f32.xlu1 %v1842_v7 }
 0x4c5   : > { %v1844_v26 = vpop.xlane.xlu1 %1843 }
 0x4c6   : > { %v1845_v52 = vrot.slane %v1844_v26, 4 }
 0x4c8   : > { %v1846_v41 = vadd.f32 %v1845_v52, %v1844_v26 }
 0x4ca   : > { %v1847_v38 = vrot.slane %v1846_v41, 2 }
 0x4cc   : > { %v1848_v56 = vadd.f32 %v1847_v38, %v1846_v41 }
 0x4ce   : > { %v1849_v49 = vrot.slane %v1848_v56, 1 }
 0x4d0   : > { %v1850_v17 = vadd.f32 %v1849_v49, %v1848_v56 }
 0x4d2   : > { %2046 = vpush %v1850_v17 }
 0x503   : > { %s2047_s17 = spop %2046 }
 0x504   : > { %s1859_s20 = sadd.f32 %s2047_s17, %s1858_s16 }
 0x506   : > { %1861 = sst [smem:[#allocation2]] %s1859_s20  ;;  %s1867_s21 = smul.f32 0.00390625, %s1859_s20 }
 0x508   : > { %2051 = sst [smem:[#allocation3]] (%p2057_p5), %s1867_s21 }
 0x509   : > { %2053 = dma.smem_to_hbm (%p2057_p5), %s2171_s22, 16, %s3236_s5, [#allocation4]  }
 0x50a   : > { %2157 = dma.done.wait (%p2057_p5), [#allocation4], 16  }
 0x50b   : > { %2159 = vsyncadd (%p2057_p5), [#allocation4], 4294967280 }
 0x50c   : > { %1883 = sfence }
 0x50d PF: > { %s16_s18 = sadd.s32 1, %s2162_s18  }
 0x50e   : > { %p13_p6 = scmp.ge.s32.totalorder %s16_s18, 4  }
 0x510   :  { %15 = sbr.rel (!%p13_p6) target bundleno = 1 (0x1), region = 78 }
 0x515   :  { %1889 = vsyncpa [#allocation4], 1 }
 0x516   :  { %1891 = vsyncpa [#allocation4 + $0x1], 1 }

</bundles_post_ra>
